<compile_context>
chip_gen: v7x
topology: tpu7x:2x2x1
jax: 0.10.0
libtpu: 0.0.40
codegen_flags: <defaults>
</compile_context>

<pallas_src>
import jax
import jax.numpy as jnp
import numpy as np
from jax.experimental import pallas as pl
from jax.experimental.pallas import tpu as pltpu

_BN_EPS = 1e-5


# ----------------------------------------------------------------------------
# Fused Pallas kernel: whole forward pass
# ----------------------------------------------------------------------------
def _fused_cnn_kernel(x_ref, w1_ref, c2_ref, c3_ref,
                      wfc1_ref, hv1_ref, wfc2_ref, hv2_ref,
                      wout_ref, bout_ref, o_ref):
    f32 = jnp.float32
    B = x_ref.shape[0]
    KF = w1_ref.shape[1]                    # num_kernels * num_faces (lane axis)

    # ---- conv1: one lane-dense MXU matmul --------------------------------
    # a[b, k*F + f] == conv1(x)[b, k, f]
    a = jnp.dot(x_ref[...], w1_ref[...], preferred_element_type=f32)      # (B, KF)

    row_id = jax.lax.broadcasted_iota(jnp.int32, (B, 1), 0)               # (B, 1)

    def gather_conv(a_in, c_ref):
        # c_ref: (KF, B*KF).  Column block b holds sample b's fused
        # (adjacency-gather o conv-weight-mix) matrix, so ONE MXU matmul does
        # the whole layer for every sample.  Row b of the block-diagonal of
        # the (B, B*KF) product is the layer output for sample b; the other
        # blocks are discarded (4x flop waste, negligible at these sizes).
        full = jnp.dot(a_in, c_ref[...], preferred_element_type=f32)      # (B, B*KF)
        out = jnp.zeros((B, KF), dtype=f32)
        for b in range(B):                                                # B static & tiny
            pick = (row_id == b).astype(f32)                              # (B, 1)
            out = out + pick * full[:, b * KF:(b + 1) * KF]
        return out

    a = gather_conv(a, c2_ref)      # gather + conv2
    a = gather_conv(a, c3_ref)      # gather + conv3
    # a[b, k*F + f] == c3[b, k, f]  == PyTorch x.reshape(B, K*F) flatten order,
    # so fc1 below uses the ORIGINAL fc1 weight with no relayout.

    def bn_relu(h, g, be):          # training-mode BatchNorm1d + ReLU
        mean = jnp.mean(h, axis=0, keepdims=True)
        var = jnp.mean(jnp.square(h - mean), axis=0, keepdims=True)
        return jnp.maximum((h - mean) * jax.lax.rsqrt(var + _BN_EPS) * g + be, 0.0)

    hv1 = hv1_ref[...]              # rows: [bias, gamma, beta]
    h = jnp.dot(a, wfc1_ref[...], preferred_element_type=f32) + hv1[0:1, :]
    h = bn_relu(h, hv1[1:2, :], hv1[2:3, :])
    hv2 = hv2_ref[...]
    h = jnp.dot(h, wfc2_ref[...], preferred_element_type=f32) + hv2[0:1, :]
    h = bn_relu(h, hv2[1:2, :], hv2[2:3, :])
    o_ref[...] = jnp.dot(h, wout_ref[...], preferred_element_type=f32) + bout_ref[...]


def cnn_fused_call(xflat, c2cat, c3cat, params):
    """xflat: (B, C*F*N) f32; c2cat/c3cat: (K*F, B*K*F) fused gather+conv mats."""
    B, CFN = xflat.shape
    KF = c2cat.shape[0]
    H1, H2 = params["w_fc2"].shape
    CLS = params["w_out"].shape[1]

    args = (xflat, params["w1_big"], c2cat, c3cat,
            params["w_fc1"], params["hv1"], params["w_fc2"], params["hv2"],
            params["w_out"], params["b_out"])

    def full_spec(a):
        nd = a.ndim
        return pl.BlockSpec(a.shape, lambda i, nd=nd: (0,) * nd)

    flops = (2 * B * CFN * KF                      # conv1
             + 2 * 2 * B * KF * (B * KF)           # fused gather+conv x2
             + 2 * B * KF * H1                     # fc1
             + 2 * B * H1 * H2 + 2 * B * H2 * CLS)  # fc2, fc_out
    bytes_accessed = int(sum(a.size * a.dtype.itemsize for a in args)) + B * CLS * 4

    return pl.pallas_call(
        _fused_cnn_kernel,
        out_shape=jax.ShapeDtypeStruct((B, CLS), jnp.float32),
        grid=(1,),
        in_specs=[full_spec(a) for a in args],
        out_specs=pl.BlockSpec((B, CLS), lambda i: (0, 0)),
        compiler_params=pltpu.CompilerParams(dimension_semantics=("arbitrary",)),
        cost_estimate=pl.CostEstimate(flops=flops, transcendentals=H1 + H2,
                                      bytes_accessed=bytes_accessed),
    )(*args)


# ----------------------------------------------------------------------------
# JAX glue: per-call preparation of the fused gather+conv matrices (tiny XLA
# work; adjacency-dependent, so it cannot be folded into init).
# ----------------------------------------------------------------------------
def cnn_forward(x_nchw, adjacencies, params):
    B, C, F, N = x_nchw.shape
    K = params["w_conv1_raw"].shape[0]
    adj = adjacencies[:, 0].astype(jnp.int32)                        # (B, F, N)
    # onehot[b, f, n, f1] = [adj[b, f, n] == f1]
    onehot = jax.nn.one_hot(adj, F, dtype=jnp.float32)               # (B, F, N, F)
    w2r = params["w_conv2_raw"][:, :, 0, :]                          # (Kout, Kin, N)
    w3r = params["w_conv3_raw"][:, :, 0, :]
    hp = jax.lax.Precision.HIGHEST                                   # keep fused mats exact f32
    # c_cat[k1*F + f1, b*K*F + k2*F + f] = sum_n w[k2, k1, n] * [adj[b,f,n] == f1]
    c2cat = jnp.einsum('bfnd,okn->kdbof', onehot, w2r,
                       precision=hp).reshape(K * F, B * K * F)
    c3cat = jnp.einsum('bfnd,okn->kdbof', onehot, w3r,
                       precision=hp).reshape(K * F, B * K * F)
    xflat = x_nchw.reshape(B, C * F * N)                             # free reshape (NCHW order)
    return cnn_fused_call(xflat, c2cat, c3cat, params)


# ----------------------------------------------------------------------------
# Deterministic parameter init (PyTorch-default-style uniform bounds).
# All weight re-layouts happen ONCE here.
# ----------------------------------------------------------------------------
def init_params(key, num_kernels, num_face_features, num_faces, num_neighbours, num_classes):
    ks = jax.random.split(key, 8)

    def u(k, shape, fan_in):
        bound = 1.0 / np.sqrt(fan_in)
        return jax.random.uniform(k, shape, jnp.float32, -bound, bound)

    K, C, N, F = num_kernels, num_face_features, num_neighbours, num_faces
    P = K * F  # post_conv_size

    w1_raw = u(ks[0], (K, C, 1, N), C * N)
    w2_raw = u(ks[1], (K, K, 1, N), K * N)
    w3_raw = u(ks[2], (K, K, 1, N), K * N)

    w_fc1 = u(ks[3], (P, 100), P)
    b_fc1 = u(ks[4], (1, 100), P)
    w_fc2 = u(ks[5], (100, 30), 100)
    b_fc2 = u(ks[6], (1, 30), 100)
    w_out = u(ks[7], (30, num_classes), 30)
    b_out = jnp.zeros((1, num_classes), jnp.float32)
    g_bn1 = jnp.ones((1, 100), jnp.float32)
    be_bn1 = jnp.zeros((1, 100), jnp.float32)
    g_bn2 = jnp.ones((1, 30), jnp.float32)
    be_bn2 = jnp.zeros((1, 30), jnp.float32)

    # conv1 as a lane-preserving matmul weight:
    # w1_big[c*F*N + f*N + n, k*F + f'] = w1[k, c, 0, n] * [f == f']
    w1r = w1_raw[:, :, 0, :]                                   # (K, C, N)
    eyeF = jnp.eye(F, dtype=jnp.float32)
    w1_big = jnp.einsum('kcn,fg->cfnkg', w1r, eyeF).reshape(C * F * N, K * F)

    params = dict(
        # raw PyTorch-layout weights (reference + per-call fused-matrix build)
        w_conv1_raw=w1_raw, w_conv2_raw=w2_raw, w_conv3_raw=w3_raw,
        w_fc1=w_fc1, b_fc1=b_fc1, g_bn1=g_bn1, be_bn1=be_bn1,
        w_fc2=w_fc2, b_fc2=b_fc2, g_bn2=g_bn2, be_bn2=be_bn2,
        w_out=w_out, b_out=b_out,
        # kernel-layout weights (one-time re-layout)
        w1_big=w1_big,                                             # (C*F*N, K*F)
        hv1=jnp.concatenate([b_fc1, g_bn1, be_bn1], axis=0),       # (3, 100)
        hv2=jnp.concatenate([b_fc2, g_bn2, be_bn2], axis=0),       # (3, 30)
    )
    return params


# ----------------------------------------------------------------------------
# Pure-JAX reference mirroring the PyTorch module (for validation)
# ----------------------------------------------------------------------------
def reference_forward(x_nchw, adjacencies, params):
    adj = adjacencies[:, 0].astype(jnp.int32)                       # (B, F, N)

    def conv(x, w):  # x: (B, Cin, F, N), w: (O, Cin, 1, N) -> (B, O, F)
        return jnp.einsum('bcfn,ocn->bof', x, w[:, :, 0, :])

    def redo(c):  # (B, K, F) -> (B, K, F, N)
        return jax.vmap(lambda ck, a: ck[:, a])(c, adj)

    c1 = conv(x_nchw, params["w_conv1_raw"])
    c2 = conv(redo(c1), params["w_conv2_raw"])
    c3 = conv(redo(c2), params["w_conv3_raw"])                      # (B, K, F)
    B, K, F = c3.shape
    flat = c3.reshape(B, K * F)

    def bn_relu(h, g, be):
        mean = jnp.mean(h, axis=0, keepdims=True)
        var = jnp.mean((h - mean) ** 2, axis=0, keepdims=True)
        return jnp.maximum((h - mean) / jnp.sqrt(var + _BN_EPS) * g + be, 0.0)

    h1 = bn_relu(flat @ params["w_fc1"] + params["b_fc1"], params["g_bn1"], params["be_bn1"])
    h2 = bn_relu(h1 @ params["w_fc2"] + params["b_fc2"], params["g_bn2"], params["be_bn2"])
    return h2 @ params["w_out"] + params["b_out"]


# ----------------------------------------------------------------------------
if __name__ == "__main__":
    # Small shapes consistent with the module: num_faces=32, num_neighbours=7,
    # num_face_features=12, num_kernels=4, num_classes=2, batch=4.
    B, C, F, N, K, CLS = 4, 12, 32, 7, 4, 2

    key = jax.random.PRNGKey(0)
    k_x, k_adj, k_p = jax.random.split(key, 3)

    x = jax.random.normal(k_x, (B, C, F, N), dtype=jnp.float32)          # NCHW
    adjacencies = jax.random.randint(k_adj, (B, 1, F, N), 0, F, dtype=jnp.int32)
    params = init_params(k_p, num_kernels=K, num_face_features=C,
                         num_faces=F, num_neighbours=N, num_classes=CLS)

    out = jax.jit(cnn_forward)(x, adjacencies, params)
    out = jax.block_until_ready(out)

    ref = reference_forward(x, adjacencies, params)
    # Relaxed tolerance: default-precision MXU dots (kernel and reference both)
    # round differently than the exact-index reference path.
    np.testing.assert_allclose(np.asarray(out), np.asarray(ref), rtol=5e-3, atol=5e-3)
    assert out.shape == (B, CLS)

    print("KERNEL_OK")
</pallas_src>

<mosaic_0001>
module attributes {stable_mosaic.version = 11 : i64} {
  func.func @_fused_cnn_kernel(%arg0: i32, %arg1: memref<4x2688xf32, #tpu.memory_space<vmem>>, %arg2: memref<2688x128xf32, #tpu.memory_space<vmem>>, %arg3: memref<128x512xf32, #tpu.memory_space<vmem>>, %arg4: memref<128x512xf32, #tpu.memory_space<vmem>>, %arg5: memref<128x100xf32, #tpu.memory_space<vmem>>, %arg6: memref<3x100xf32, #tpu.memory_space<vmem>>, %arg7: memref<100x30xf32, #tpu.memory_space<vmem>>, %arg8: memref<3x30xf32, #tpu.memory_space<vmem>>, %arg9: memref<30x2xf32, #tpu.memory_space<vmem>>, %arg10: memref<1x2xf32, #tpu.memory_space<vmem>>, %arg11: memref<4x2xf32, #tpu.memory_space<vmem>>) attributes {dimension_semantics = [#tpu.dimension_semantics<arbitrary>], iteration_bounds = array<i64: 1>, scalar_prefetch = 0 : i64, scratch_operands = 0 : i64, tpu.core_type = #tpu.core_type<tc>, window_params = [{pipeline_mode = #tpu.pipeline_mode<synchronous>, transform_indices = @transform_0, window_bounds = array<i64: 4, 2688>}, {pipeline_mode = #tpu.pipeline_mode<synchronous>, transform_indices = @transform_1, window_bounds = array<i64: 2688, 128>}, {pipeline_mode = #tpu.pipeline_mode<synchronous>, transform_indices = @transform_2, window_bounds = array<i64: 128, 512>}, {pipeline_mode = #tpu.pipeline_mode<synchronous>, transform_indices = @transform_3, window_bounds = array<i64: 128, 512>}, {pipeline_mode = #tpu.pipeline_mode<synchronous>, transform_indices = @transform_4, window_bounds = array<i64: 128, 100>}, {pipeline_mode = #tpu.pipeline_mode<synchronous>, transform_indices = @transform_5, window_bounds = array<i64: 3, 100>}, {pipeline_mode = #tpu.pipeline_mode<synchronous>, transform_indices = @transform_6, window_bounds = array<i64: 100, 30>}, {pipeline_mode = #tpu.pipeline_mode<synchronous>, transform_indices = @transform_7, window_bounds = array<i64: 3, 30>}, {pipeline_mode = #tpu.pipeline_mode<synchronous>, transform_indices = @transform_8, window_bounds = array<i64: 30, 2>}, {pipeline_mode = #tpu.pipeline_mode<synchronous>, transform_indices = @transform_9, window_bounds = array<i64: 1, 2>}, {pipeline_mode = #tpu.pipeline_mode<synchronous>, transform_indices = @transform_10, window_bounds = array<i64: 4, 2>}]} {
    %c0 = arith.constant 0 : index
    %c0_0 = arith.constant 0 : index
    %0 = vector.load %arg1[%c0, %c0_0] : memref<4x2688xf32, #tpu.memory_space<vmem>>, vector<4x2688xf32>
    %c0_1 = arith.constant 0 : index
    %c0_2 = arith.constant 0 : index
    %1 = vector.load %arg2[%c0_1, %c0_2] : memref<2688x128xf32, #tpu.memory_space<vmem>>, vector<2688x128xf32>
    %cst = arith.constant dense<0.000000e+00> : vector<4x128xf32>
    %2 = tpu.matmul %0, %1, %cst {dimension_numbers = #tpu.dot_dimension_numbers<[1], [0], [0], [1], [0, 0, 1, 1], [], []>} : vector<4x2688xf32>, vector<2688x128xf32>, vector<4x128xf32> -> vector<4x128xf32>
    %3 = tpu.iota {dimensions = array<i32: 0>} : vector<4x1xi32>
    %c0_3 = arith.constant 0 : index
    %c0_4 = arith.constant 0 : index
    %4 = vector.load %arg3[%c0_3, %c0_4] : memref<128x512xf32, #tpu.memory_space<vmem>>, vector<128x512xf32>
    %cst_5 = arith.constant dense<0.000000e+00> : vector<4x512xf32>
    %5 = tpu.matmul %2, %4, %cst_5 {dimension_numbers = #tpu.dot_dimension_numbers<[1], [0], [0], [1], [0, 0, 1, 1], [], []>} : vector<4x128xf32>, vector<128x512xf32>, vector<4x512xf32> -> vector<4x512xf32>
    %cst_6 = arith.constant 0.000000e+00 : f32
    %6 = vector.broadcast %cst_6 : f32 to vector<4x128xf32>
    %c0_i32 = arith.constant 0 : i32
    %7 = vector.broadcast %c0_i32 : i32 to vector<4x1xi32>
    %8 = arith.cmpi eq, %3, %7 : vector<4x1xi32>
    %9 = arith.extui %8 : vector<4x1xi1> to vector<4x1xi32>
    %10 = arith.sitofp %9 : vector<4x1xi32> to vector<4x1xf32>
    %11 = vector.extract_strided_slice %5 {offsets = [0, 0], sizes = [4, 128], strides = [1, 1]} : vector<4x512xf32> to vector<4x128xf32>
    %12 = vector.broadcast %10 : vector<4x1xf32> to vector<4x128xf32>
    %13 = arith.mulf %12, %11 : vector<4x128xf32>
    %14 = arith.addf %6, %13 : vector<4x128xf32>
    %c1_i32 = arith.constant 1 : i32
    %15 = vector.broadcast %c1_i32 : i32 to vector<4x1xi32>
    %16 = arith.cmpi eq, %3, %15 : vector<4x1xi32>
    %17 = arith.extui %16 : vector<4x1xi1> to vector<4x1xi32>
    %18 = arith.sitofp %17 : vector<4x1xi32> to vector<4x1xf32>
    %19 = vector.extract_strided_slice %5 {offsets = [0, 128], sizes = [4, 128], strides = [1, 1]} : vector<4x512xf32> to vector<4x128xf32>
    %20 = vector.broadcast %18 : vector<4x1xf32> to vector<4x128xf32>
    %21 = arith.mulf %20, %19 : vector<4x128xf32>
    %22 = arith.addf %14, %21 : vector<4x128xf32>
    %c2_i32 = arith.constant 2 : i32
    %23 = vector.broadcast %c2_i32 : i32 to vector<4x1xi32>
    %24 = arith.cmpi eq, %3, %23 : vector<4x1xi32>
    %25 = arith.extui %24 : vector<4x1xi1> to vector<4x1xi32>
    %26 = arith.sitofp %25 : vector<4x1xi32> to vector<4x1xf32>
    %27 = vector.extract_strided_slice %5 {offsets = [0, 256], sizes = [4, 128], strides = [1, 1]} : vector<4x512xf32> to vector<4x128xf32>
    %28 = vector.broadcast %26 : vector<4x1xf32> to vector<4x128xf32>
    %29 = arith.mulf %28, %27 : vector<4x128xf32>
    %30 = arith.addf %22, %29 : vector<4x128xf32>
    %c3_i32 = arith.constant 3 : i32
    %31 = vector.broadcast %c3_i32 : i32 to vector<4x1xi32>
    %32 = arith.cmpi eq, %3, %31 : vector<4x1xi32>
    %33 = arith.extui %32 : vector<4x1xi1> to vector<4x1xi32>
    %34 = arith.sitofp %33 : vector<4x1xi32> to vector<4x1xf32>
    %35 = vector.extract_strided_slice %5 {offsets = [0, 384], sizes = [4, 128], strides = [1, 1]} : vector<4x512xf32> to vector<4x128xf32>
    %36 = vector.broadcast %34 : vector<4x1xf32> to vector<4x128xf32>
    %37 = arith.mulf %36, %35 : vector<4x128xf32>
    %38 = arith.addf %30, %37 : vector<4x128xf32>
    %c0_7 = arith.constant 0 : index
    %c0_8 = arith.constant 0 : index
    %39 = vector.load %arg4[%c0_7, %c0_8] : memref<128x512xf32, #tpu.memory_space<vmem>>, vector<128x512xf32>
    %cst_9 = arith.constant dense<0.000000e+00> : vector<4x512xf32>
    %40 = tpu.matmul %38, %39, %cst_9 {dimension_numbers = #tpu.dot_dimension_numbers<[1], [0], [0], [1], [0, 0, 1, 1], [], []>} : vector<4x128xf32>, vector<128x512xf32>, vector<4x512xf32> -> vector<4x512xf32>
    %cst_10 = arith.constant 0.000000e+00 : f32
    %41 = vector.broadcast %cst_10 : f32 to vector<4x128xf32>
    %c0_i32_11 = arith.constant 0 : i32
    %42 = vector.broadcast %c0_i32_11 : i32 to vector<4x1xi32>
    %43 = arith.cmpi eq, %3, %42 : vector<4x1xi32>
    %44 = arith.extui %43 : vector<4x1xi1> to vector<4x1xi32>
    %45 = arith.sitofp %44 : vector<4x1xi32> to vector<4x1xf32>
    %46 = vector.extract_strided_slice %40 {offsets = [0, 0], sizes = [4, 128], strides = [1, 1]} : vector<4x512xf32> to vector<4x128xf32>
    %47 = vector.broadcast %45 : vector<4x1xf32> to vector<4x128xf32>
    %48 = arith.mulf %47, %46 : vector<4x128xf32>
    %49 = arith.addf %41, %48 : vector<4x128xf32>
    %c1_i32_12 = arith.constant 1 : i32
    %50 = vector.broadcast %c1_i32_12 : i32 to vector<4x1xi32>
    %51 = arith.cmpi eq, %3, %50 : vector<4x1xi32>
    %52 = arith.extui %51 : vector<4x1xi1> to vector<4x1xi32>
    %53 = arith.sitofp %52 : vector<4x1xi32> to vector<4x1xf32>
    %54 = vector.extract_strided_slice %40 {offsets = [0, 128], sizes = [4, 128], strides = [1, 1]} : vector<4x512xf32> to vector<4x128xf32>
    %55 = vector.broadcast %53 : vector<4x1xf32> to vector<4x128xf32>
    %56 = arith.mulf %55, %54 : vector<4x128xf32>
    %57 = arith.addf %49, %56 : vector<4x128xf32>
    %c2_i32_13 = arith.constant 2 : i32
    %58 = vector.broadcast %c2_i32_13 : i32 to vector<4x1xi32>
    %59 = arith.cmpi eq, %3, %58 : vector<4x1xi32>
    %60 = arith.extui %59 : vector<4x1xi1> to vector<4x1xi32>
    %61 = arith.sitofp %60 : vector<4x1xi32> to vector<4x1xf32>
    %62 = vector.extract_strided_slice %40 {offsets = [0, 256], sizes = [4, 128], strides = [1, 1]} : vector<4x512xf32> to vector<4x128xf32>
    %63 = vector.broadcast %61 : vector<4x1xf32> to vector<4x128xf32>
    %64 = arith.mulf %63, %62 : vector<4x128xf32>
    %65 = arith.addf %57, %64 : vector<4x128xf32>
    %c3_i32_14 = arith.constant 3 : i32
    %66 = vector.broadcast %c3_i32_14 : i32 to vector<4x1xi32>
    %67 = arith.cmpi eq, %3, %66 : vector<4x1xi32>
    %68 = arith.extui %67 : vector<4x1xi1> to vector<4x1xi32>
    %69 = arith.sitofp %68 : vector<4x1xi32> to vector<4x1xf32>
    %70 = vector.extract_strided_slice %40 {offsets = [0, 384], sizes = [4, 128], strides = [1, 1]} : vector<4x512xf32> to vector<4x128xf32>
    %71 = vector.broadcast %69 : vector<4x1xf32> to vector<4x128xf32>
    %72 = arith.mulf %71, %70 : vector<4x128xf32>
    %73 = arith.addf %65, %72 : vector<4x128xf32>
    %c0_15 = arith.constant 0 : index
    %c0_16 = arith.constant 0 : index
    %74 = vector.load %arg6[%c0_15, %c0_16] : memref<3x100xf32, #tpu.memory_space<vmem>>, vector<3x100xf32>
    %c0_17 = arith.constant 0 : index
    %c0_18 = arith.constant 0 : index
    %75 = vector.load %arg5[%c0_17, %c0_18] : memref<128x100xf32, #tpu.memory_space<vmem>>, vector<128x100xf32>
    %cst_19 = arith.constant dense<0.000000e+00> : vector<4x100xf32>
    %76 = tpu.matmul %73, %75, %cst_19 {dimension_numbers = #tpu.dot_dimension_numbers<[1], [0], [0], [1], [0, 0, 1, 1], [], []>} : vector<4x128xf32>, vector<128x100xf32>, vector<4x100xf32> -> vector<4x100xf32>
    %77 = vector.extract_strided_slice %74 {offsets = [0, 0], sizes = [1, 100], strides = [1, 1]} : vector<3x100xf32> to vector<1x100xf32>
    %78 = vector.broadcast %77 : vector<1x100xf32> to vector<4x100xf32>
    %79 = arith.addf %76, %78 : vector<4x100xf32>
    %80 = vector.extract_strided_slice %74 {offsets = [1, 0], sizes = [1, 100], strides = [1, 1]} : vector<3x100xf32> to vector<1x100xf32>
    %81 = vector.extract_strided_slice %74 {offsets = [2, 0], sizes = [1, 100], strides = [1, 1]} : vector<3x100xf32> to vector<1x100xf32>
    %cst_20 = arith.constant dense<0.000000e+00> : vector<100xf32>
    %82 = vector.multi_reduction <add>, %79, %cst_20 [0] : vector<4x100xf32> to vector<100xf32>
    %83 = vector.shape_cast %82 : vector<100xf32> to vector<1x100xf32>
    %cst_21 = arith.constant 4.000000e+00 : f32
    %84 = vector.broadcast %cst_21 : f32 to vector<1x100xf32>
    %85 = arith.divf %83, %84 : vector<1x100xf32>
    %86 = vector.broadcast %85 : vector<1x100xf32> to vector<4x100xf32>
    %87 = arith.subf %79, %86 : vector<4x100xf32>
    %88 = arith.mulf %87, %87 : vector<4x100xf32>
    %cst_22 = arith.constant dense<0.000000e+00> : vector<100xf32>
    %89 = vector.multi_reduction <add>, %88, %cst_22 [0] : vector<4x100xf32> to vector<100xf32>
    %90 = vector.shape_cast %89 : vector<100xf32> to vector<1x100xf32>
    %cst_23 = arith.constant 4.000000e+00 : f32
    %91 = vector.broadcast %cst_23 : f32 to vector<1x100xf32>
    %92 = arith.divf %90, %91 : vector<1x100xf32>
    %93 = vector.broadcast %85 : vector<1x100xf32> to vector<4x100xf32>
    %94 = arith.subf %79, %93 : vector<4x100xf32>
    %cst_24 = arith.constant 9.99999974E-6 : f32
    %95 = vector.broadcast %cst_24 : f32 to vector<1x100xf32>
    %96 = arith.addf %92, %95 : vector<1x100xf32>
    %97 = math.rsqrt %96 : vector<1x100xf32>
    %98 = vector.broadcast %97 : vector<1x100xf32> to vector<4x100xf32>
    %99 = arith.mulf %94, %98 : vector<4x100xf32>
    %100 = vector.broadcast %80 : vector<1x100xf32> to vector<4x100xf32>
    %101 = arith.mulf %99, %100 : vector<4x100xf32>
    %102 = vector.broadcast %81 : vector<1x100xf32> to vector<4x100xf32>
    %103 = arith.addf %101, %102 : vector<4x100xf32>
    %cst_25 = arith.constant 0.000000e+00 : f32
    %104 = vector.broadcast %cst_25 : f32 to vector<4x100xf32>
    %105 = arith.maximumf %103, %104 : vector<4x100xf32>
    %c0_26 = arith.constant 0 : index
    %c0_27 = arith.constant 0 : index
    %106 = vector.load %arg8[%c0_26, %c0_27] : memref<3x30xf32, #tpu.memory_space<vmem>>, vector<3x30xf32>
    %c0_28 = arith.constant 0 : index
    %c0_29 = arith.constant 0 : index
    %107 = vector.load %arg7[%c0_28, %c0_29] : memref<100x30xf32, #tpu.memory_space<vmem>>, vector<100x30xf32>
    %cst_30 = arith.constant dense<0.000000e+00> : vector<4x30xf32>
    %108 = tpu.matmul %105, %107, %cst_30 {dimension_numbers = #tpu.dot_dimension_numbers<[1], [0], [0], [1], [0, 0, 1, 1], [], []>} : vector<4x100xf32>, vector<100x30xf32>, vector<4x30xf32> -> vector<4x30xf32>
    %109 = vector.extract_strided_slice %106 {offsets = [0, 0], sizes = [1, 30], strides = [1, 1]} : vector<3x30xf32> to vector<1x30xf32>
    %110 = vector.broadcast %109 : vector<1x30xf32> to vector<4x30xf32>
    %111 = arith.addf %108, %110 : vector<4x30xf32>
    %112 = vector.extract_strided_slice %106 {offsets = [1, 0], sizes = [1, 30], strides = [1, 1]} : vector<3x30xf32> to vector<1x30xf32>
    %113 = vector.extract_strided_slice %106 {offsets = [2, 0], sizes = [1, 30], strides = [1, 1]} : vector<3x30xf32> to vector<1x30xf32>
    %cst_31 = arith.constant dense<0.000000e+00> : vector<30xf32>
    %114 = vector.multi_reduction <add>, %111, %cst_31 [0] : vector<4x30xf32> to vector<30xf32>
    %115 = vector.shape_cast %114 : vector<30xf32> to vector<1x30xf32>
    %cst_32 = arith.constant 4.000000e+00 : f32
    %116 = vector.broadcast %cst_32 : f32 to vector<1x30xf32>
    %117 = arith.divf %115, %116 : vector<1x30xf32>
    %118 = vector.broadcast %117 : vector<1x30xf32> to vector<4x30xf32>
    %119 = arith.subf %111, %118 : vector<4x30xf32>
    %120 = arith.mulf %119, %119 : vector<4x30xf32>
    %cst_33 = arith.constant dense<0.000000e+00> : vector<30xf32>
    %121 = vector.multi_reduction <add>, %120, %cst_33 [0] : vector<4x30xf32> to vector<30xf32>
    %122 = vector.shape_cast %121 : vector<30xf32> to vector<1x30xf32>
    %cst_34 = arith.constant 4.000000e+00 : f32
    %123 = vector.broadcast %cst_34 : f32 to vector<1x30xf32>
    %124 = arith.divf %122, %123 : vector<1x30xf32>
    %125 = vector.broadcast %117 : vector<1x30xf32> to vector<4x30xf32>
    %126 = arith.subf %111, %125 : vector<4x30xf32>
    %cst_35 = arith.constant 9.99999974E-6 : f32
    %127 = vector.broadcast %cst_35 : f32 to vector<1x30xf32>
    %128 = arith.addf %124, %127 : vector<1x30xf32>
    %129 = math.rsqrt %128 : vector<1x30xf32>
    %130 = vector.broadcast %129 : vector<1x30xf32> to vector<4x30xf32>
    %131 = arith.mulf %126, %130 : vector<4x30xf32>
    %132 = vector.broadcast %112 : vector<1x30xf32> to vector<4x30xf32>
    %133 = arith.mulf %131, %132 : vector<4x30xf32>
    %134 = vector.broadcast %113 : vector<1x30xf32> to vector<4x30xf32>
    %135 = arith.addf %133, %134 : vector<4x30xf32>
    %cst_36 = arith.constant 0.000000e+00 : f32
    %136 = vector.broadcast %cst_36 : f32 to vector<4x30xf32>
    %137 = arith.maximumf %135, %136 : vector<4x30xf32>
    %c0_37 = arith.constant 0 : index
    %c0_38 = arith.constant 0 : index
    %138 = vector.load %arg9[%c0_37, %c0_38] : memref<30x2xf32, #tpu.memory_space<vmem>>, vector<30x2xf32>
    %cst_39 = arith.constant dense<0.000000e+00> : vector<4x2xf32>
    %139 = tpu.matmul %137, %138, %cst_39 {dimension_numbers = #tpu.dot_dimension_numbers<[1], [0], [0], [1], [0, 0, 1, 1], [], []>} : vector<4x30xf32>, vector<30x2xf32>, vector<4x2xf32> -> vector<4x2xf32>
    %c0_40 = arith.constant 0 : index
    %c0_41 = arith.constant 0 : index
    %140 = vector.load %arg10[%c0_40, %c0_41] : memref<1x2xf32, #tpu.memory_space<vmem>>, vector<1x2xf32>
    %141 = vector.broadcast %140 : vector<1x2xf32> to vector<4x2xf32>
    %142 = arith.addf %139, %141 : vector<4x2xf32>
    %c0_42 = arith.constant 0 : index
    %c0_43 = arith.constant 0 : index
    %143 = vector.load %arg11[%c0_42, %c0_43] : memref<4x2xf32, #tpu.memory_space<vmem>>, vector<4x2xf32>
    tpu.vector_store %arg11[%c0_42, %c0_43], %142 {strides = array<i32>} : memref<4x2xf32, #tpu.memory_space<vmem>>, vector<4x2xf32>,
    return
  }
  func.func @transform_0(%arg0: i32) -> (i32, i32) {
    %c0_i32 = arith.constant 0 : i32
    %c0_i32_0 = arith.constant 0 : i32
    %c0_i32_1 = arith.constant 0 : i32
    return %c0_i32, %c0_i32_0 : i32, i32
  }
  func.func @transform_1(%arg0: i32) -> (i32, i32) {
    %c0_i32 = arith.constant 0 : i32
    %c0_i32_0 = arith.constant 0 : i32
    %c0_i32_1 = arith.constant 0 : i32
    return %c0_i32, %c0_i32_0 : i32, i32
  }
  func.func @transform_2(%arg0: i32) -> (i32, i32) {
    %c0_i32 = arith.constant 0 : i32
    %c0_i32_0 = arith.constant 0 : i32
    %c0_i32_1 = arith.constant 0 : i32
    return %c0_i32, %c0_i32_0 : i32, i32
  }
  func.func @transform_3(%arg0: i32) -> (i32, i32) {
    %c0_i32 = arith.constant 0 : i32
    %c0_i32_0 = arith.constant 0 : i32
    %c0_i32_1 = arith.constant 0 : i32
    return %c0_i32, %c0_i32_0 : i32, i32
  }
  func.func @transform_4(%arg0: i32) -> (i32, i32) {
    %c0_i32 = arith.constant 0 : i32
    %c0_i32_0 = arith.constant 0 : i32
    %c0_i32_1 = arith.constant 0 : i32
    return %c0_i32, %c0_i32_0 : i32, i32
  }
  func.func @transform_5(%arg0: i32) -> (i32, i32) {
    %c0_i32 = arith.constant 0 : i32
    %c0_i32_0 = arith.constant 0 : i32
    %c0_i32_1 = arith.constant 0 : i32
    return %c0_i32, %c0_i32_0 : i32, i32
  }
  func.func @transform_6(%arg0: i32) -> (i32, i32) {
    %c0_i32 = arith.constant 0 : i32
    %c0_i32_0 = arith.constant 0 : i32
    %c0_i32_1 = arith.constant 0 : i32
    return %c0_i32, %c0_i32_0 : i32, i32
  }
  func.func @transform_7(%arg0: i32) -> (i32, i32) {
    %c0_i32 = arith.constant 0 : i32
    %c0_i32_0 = arith.constant 0 : i32
    %c0_i32_1 = arith.constant 0 : i32
    return %c0_i32, %c0_i32_0 : i32, i32
  }
  func.func @transform_8(%arg0: i32) -> (i32, i32) {
    %c0_i32 = arith.constant 0 : i32
    %c0_i32_0 = arith.constant 0 : i32
    %c0_i32_1 = arith.constant 0 : i32
    return %c0_i32, %c0_i32_0 : i32, i32
  }
  func.func @transform_9(%arg0: i32) -> (i32, i32) {
    %c0_i32 = arith.constant 0 : i32
    %c0_i32_0 = arith.constant 0 : i32
    %c0_i32_1 = arith.constant 0 : i32
    return %c0_i32, %c0_i32_0 : i32, i32
  }
  func.func @transform_10(%arg0: i32) -> (i32, i32) {
    %c0_i32 = arith.constant 0 : i32
    %c0_i32_0 = arith.constant 0 : i32
    %c0_i32_1 = arith.constant 0 : i32
    return %c0_i32, %c0_i32_0 : i32, i32
  }
}

</mosaic_0001>

<bundles_post_ra>
// kernel: cnn_forward.1
= control target key start
LH: loop header
LB: loop body
LE: loop exit
PB: predicated region body
PF: predicated region fallthrough
CT: control target
= control target key end

     0   :  { %vm3035_vm0 = vmmov 0   ;;  %vm1771_vm5 = vcmask 1043456   ;;  %vm1715_vm6 = vcmask 814080   ;;  %vm1767_vm7 = vcmask 818176   ;;  %s4730_s1 = inlined_call_operand.vmem [shape: f32[2688,128], index: 1, kind: input, shape index: {}]   ;;  %s4731_s0 = inlined_call_operand.vmem [shape: f32[4,2688], index: 0, kind: input, shape index: {}]   ;;  %s4732_s2 = inlined_call_operand.vmem [shape: f32[128,512], index: 2, kind: input, shape index: {}]   ;;  %s4733_s3 = inlined_call_operand.vmem [shape: f32[128,512], index: 3, kind: input, shape index: {}]   ;;  %s4734_s4 = inlined_call_operand.vmem [shape: f32[128,100], index: 4, kind: input, shape index: {}]   ;;  %s4735_s6 = inlined_call_operand.vmem [shape: f32[100,30], index: 6, kind: input, shape index: {}]   ;;  %s4736_s5 = inlined_call_operand.vmem [shape: f32[3,100], index: 5, kind: input, shape index: {}]   ;;  %s4737_s8 = inlined_call_operand.vmem [shape: f32[30,2], index: 8, kind: input, shape index: {}]   ;;  %s4738_s7 = inlined_call_operand.vmem [shape: f32[3,30], index: 7, kind: input, shape index: {}]   ;;  %s4739_s9 = inlined_call_operand.vmem [shape: f32[1,2], index: 9, kind: input, shape index: {}]   ;;  %s4740_s10 = inlined_call_operand.vmem [shape: f32[4,2], index: 10, kind: output, shape index: {}]  }
   0x1   :  { %v62_v0 = vld [vmem:[%s4730_s1 + $0x80] sm:$0xff]  ;;  %v63_v1 = vld [vmem:[%s4730_s1 + $0x88] sm:$0xff]  ;;  %v64_v11 = vld [vmem:[%s4730_s1 + $0x90] sm:$0xff]  ;;  %vm1893_vm8 = vcmask 1045504   ;;  %vm3037_vm9 = vmmov 1   ;;  %vm1845_vm11 = vcmask 240640  }
   0x2   :  { %v94_v2 = vld [vmem:[%s4730_s1 + $0x180] sm:$0xff]  ;;  %v2495_v3 = vpack.c.bf16 %v63_v1, %v62_v0  ;;  %v95_v4 = vld [vmem:[%s4730_s1 + $0x188] sm:$0xff]  ;;  %v65_v13 = vld [vmem:[%s4730_s1 + $0x98] sm:$0xff]  ;;  %vm1889_vm12 = vcmask 244736   ;;  %vm1967_vm13 = vcmask 11264  }
   0x3   :  { %v46_v5 = vld [vmem:[%s4730_s1] sm:$0xff]  ;;  %v47_v6 = vld [vmem:[%s4730_s1 + $0x8] sm:$0xff]  ;;  %v2527_v7 = vpack.c.bf16 %v95_v4, %v94_v2  ;;  %v96_v14 = vld [vmem:[%s4730_s1 + $0x190] sm:$0xff]  ;;  %v2499_v16 = vpack.c.bf16 %v65_v13, %v64_v11 }
   0x4   :  { %v2497_v8 = vpack.c.bf16 %v47_v6, %v46_v5  ;;  %v78_v9 = vld [vmem:[%s4730_s1 + $0x100] sm:$0xff]  ;;  %v79_v10 = vld [vmem:[%s4730_s1 + $0x108] sm:$0xff]  ;;  %2496 = vmatprep.subr.bf16.mxu0 %v2495_v3  ;;  %v97_v15 = vld [vmem:[%s4730_s1 + $0x198] sm:$0xff] }
   0x5   :  { %v2529_v12 = vpack.c.bf16 %v79_v10, %v78_v9  ;;  %2528 = vmatprep.subr.bf16.mxu1 %v2527_v7  ;;  %v2531_v17 = vpack.c.bf16 %v97_v15, %v96_v14  ;;  %v48_v18 = vld [vmem:[%s4730_s1 + $0x10] sm:$0xff]  ;;  %v49_v19 = vld [vmem:[%s4730_s1 + $0x18] sm:$0xff]  ;;  %v66_v23 = vld [vmem:[%s4730_s1 + $0xa0] sm:$0xff] }
   0x6   :  { %2498 = vmatpush3.bf16.msra.mxu0 %v2497_v8  ;;  %v80_v20 = vld [vmem:[%s4730_s1 + $0x110] sm:$0xff]  ;;  %v2501_v21 = vpack.c.bf16 %v49_v19, %v48_v18  ;;  %v81_v22 = vld [vmem:[%s4730_s1 + $0x118] sm:$0xff]  ;;  %v67_v24 = vld [vmem:[%s4730_s1 + $0xa8] sm:$0xff] }
   0x7   :  { %2530 = vmatpush3.bf16.msra.mxu1 %v2529_v12  ;;  %2500 = vmatprep.subr.bf16.mxu0 %v2499_v16  ;;  %v2533_v25 = vpack.c.bf16 %v81_v22, %v80_v20  ;;  %v2503_v26 = vpack.c.bf16 %v67_v24, %v66_v23  ;;  %v98_v27 = vld [vmem:[%s4730_s1 + $0x1a0] sm:$0xff]  ;;  %v99_v28 = vld [vmem:[%s4730_s1 + $0x1a8] sm:$0xff]  ;;  %v68_v35 = vld [vmem:[%s4730_s1 + $0xb0] sm:$0xff] }
   0x8   :  { %2532 = vmatprep.subr.bf16.mxu1 %v2531_v17  ;;  %v50_v29 = vld [vmem:[%s4730_s1 + $0x20] sm:$0xff]  ;;  %v2535_v30 = vpack.c.bf16 %v99_v28, %v98_v27  ;;  %v51_v31 = vld [vmem:[%s4730_s1 + $0x28] sm:$0xff]  ;;  %v69_v36 = vld [vmem:[%s4730_s1 + $0xb8] sm:$0xff] }
   0x9   :  { %v82_v32 = vld [vmem:[%s4730_s1 + $0x120] sm:$0xff]  ;;  %v83_v33 = vld [vmem:[%s4730_s1 + $0x128] sm:$0xff]  ;;  %v2505_v34 = vpack.c.bf16 %v51_v31, %v50_v29  ;;  %v100_v37 = vld [vmem:[%s4730_s1 + $0x1b0] sm:$0xff]  ;;  %v2507_v39 = vpack.c.bf16 %v69_v36, %v68_v35 }
   0xa   :  { %2502 = vmatpush3.bf16.msra.mxu0 %v2501_v21  ;;  %v2537_v38 = vpack.c.bf16 %v83_v33, %v82_v32  ;;  %v101_v40 = vld [vmem:[%s4730_s1 + $0x1b8] sm:$0xff]  ;;  %v52_v41 = vld [vmem:[%s4730_s1 + $0x30] sm:$0xff]  ;;  %v70_v46 = vld [vmem:[%s4730_s1 + $0xc0] sm:$0xff] }
   0xb   :  { %2534 = vmatpush3.bf16.msra.mxu1 %v2533_v25  ;;  %2504 = vmatprep.subr.bf16.mxu0 %v2503_v26  ;;  %v53_v42 = vld [vmem:[%s4730_s1 + $0x38] sm:$0xff]  ;;  %v2539_v43 = vpack.c.bf16 %v101_v40, %v100_v37  ;;  %v84_v44 = vld [vmem:[%s4730_s1 + $0x130] sm:$0xff]  ;;  %v71_v47 = vld [vmem:[%s4730_s1 + $0xc8] sm:$0xff] }
   0xc   :  { %2536 = vmatprep.subr.bf16.mxu1 %v2535_v30  ;;  %v85_v45 = vld [vmem:[%s4730_s1 + $0x138] sm:$0xff]  ;;  %v102_v48 = vld [vmem:[%s4730_s1 + $0x1c0] sm:$0xff]  ;;  %v103_v49 = vld [vmem:[%s4730_s1 + $0x1c8] sm:$0xff]  ;;  %v2509_v50 = vpack.c.bf16 %v53_v42, %v52_v41  ;;  %v2511_v52 = vpack.c.bf16 %v71_v47, %v70_v46 }
   0xd   :  { %v2541_v51 = vpack.c.bf16 %v85_v45, %v84_v44  ;;  %v54_v53 = vld [vmem:[%s4730_s1 + $0x40] sm:$0xff]  ;;  %v55_v54 = vld [vmem:[%s4730_s1 + $0x48] sm:$0xff]  ;;  %v2543_v56 = vpack.c.bf16 %v103_v49, %v102_v48  ;;  %v72_v58 = vld [vmem:[%s4730_s1 + $0xd0] sm:$0xff] }
   0xe   :  { %2506 = vmatpush3.bf16.msra.mxu0 %v2505_v34  ;;  %v86_v55 = vld [vmem:[%s4730_s1 + $0x140] sm:$0xff]  ;;  %v87_v57 = vld [vmem:[%s4730_s1 + $0x148] sm:$0xff]  ;;  %v73_v59 = vld [vmem:[%s4730_s1 + $0xd8] sm:$0xff]  ;;  %v2513_v62 = vpack.c.bf16 %v55_v54, %v54_v53 }
   0xf   :  { %2538 = vmatpush3.bf16.msra.mxu1 %v2537_v38  ;;  %2508 = vmatprep.subr.bf16.mxu0 %v2507_v39  ;;  %v104_v60 = vld [vmem:[%s4730_s1 + $0x1d0] sm:$0xff]  ;;  %v105_v61 = vld [vmem:[%s4730_s1 + $0x1d8] sm:$0xff]  ;;  %v2545_v63 = vpack.c.bf16 %v87_v57, %v86_v55  ;;  %v2515_v0 = vpack.c.bf16 %v73_v59, %v72_v58  ;;  %v74_v6 = vld [vmem:[%s4730_s1 + $0xe0] sm:$0xff] }
  0x10   :  { %2540 = vmatprep.subr.bf16.mxu1 %v2539_v43  ;;  %v56_v1 = vld [vmem:[%s4730_s1 + $0x50] sm:$0xff]  ;;  %v57_v2 = vld [vmem:[%s4730_s1 + $0x58] sm:$0xff]  ;;  %v2547_v4 = vpack.c.bf16 %v105_v61, %v104_v60  ;;  %v75_v7 = vld [vmem:[%s4730_s1 + $0xe8] sm:$0xff] }
  0x11   :  { %v88_v3 = vld [vmem:[%s4730_s1 + $0x150] sm:$0xff]  ;;  %v89_v5 = vld [vmem:[%s4730_s1 + $0x158] sm:$0xff]  ;;  %v106_v8 = vld [vmem:[%s4730_s1 + $0x1e0] sm:$0xff]  ;;  %v2517_v10 = vpack.c.bf16 %v57_v2, %v56_v1  ;;  %v2519_v14 = vpack.c.bf16 %v75_v7, %v74_v6 }
  0x12   :  { %2510 = vmatpush3.bf16.msra.mxu0 %v2509_v50  ;;  %v107_v9 = vld [vmem:[%s4730_s1 + $0x1e8] sm:$0xff]  ;;  %v58_v11 = vld [vmem:[%s4730_s1 + $0x60] sm:$0xff]  ;;  %v2549_v13 = vpack.c.bf16 %v89_v5, %v88_v3  ;;  %v76_v20 = vld [vmem:[%s4730_s1 + $0xf0] sm:$0xff] }
  0x13   :  { %2542 = vmatpush3.bf16.msra.mxu1 %v2541_v51  ;;  %2512 = vmatprep.subr.bf16.mxu0 %v2511_v52  ;;  %v59_v12 = vld [vmem:[%s4730_s1 + $0x68] sm:$0xff]  ;;  %v90_v15 = vld [vmem:[%s4730_s1 + $0x160] sm:$0xff]  ;;  %v2551_v18 = vpack.c.bf16 %v107_v9, %v106_v8  ;;  %v77_v21 = vld [vmem:[%s4730_s1 + $0xf8] sm:$0xff] }
  0x14   :  { %2544 = vmatprep.subr.bf16.mxu1 %v2543_v56  ;;  %v35_v16 = vld [vmem:[%s4731_s0] sm:$0xff]  ;;  %v36_v17 = vld [vmem:[%s4731_s0 + $0x8] sm:$0xff]  ;;  %v108_v24 = vld [vmem:[%s4730_s1 + $0x1f0] sm:$0xff]  ;;  %v2521_v26 = vpack.c.bf16 %v59_v12, %v58_v11  ;;  %v2523_v28 = vpack.c.bf16 %v77_v21, %v76_v20 }
  0x15   :  { %v91_v19 = vld [vmem:[%s4730_s1 + $0x168] sm:$0xff]  ;;  %v392_v22 = vcombine.high %v35_v16, %v35_v16  ;;  %v393_v23 = vcombine.high %v36_v17, %v36_v17  ;;  %v109_v25 = vld [vmem:[%s4730_s1 + $0x1f8] sm:$0xff]  ;;  %v60_v29 = vld [vmem:[%s4730_s1 + $0x70] sm:$0xff] }
  0x16   :  { %2514 = vmatpush3.bf16.msra.mxu0 %v2513_v62  ;;  %v2553_v27 = vpack.c.bf16 %v91_v19, %v90_v15  ;;  %v61_v30 = vld [vmem:[%s4730_s1 + $0x78] sm:$0xff]  ;;  %v92_v31 = vld [vmem:[%s4730_s1 + $0x170] sm:$0xff]  ;;  %v2555_v32 = vpack.c.bf16 %v109_v25, %v108_v24  ;;  %v126_v34 = vld [vmem:[%s4730_s1 + $0x280] sm:$0xff] }
  0x17   :  { %2546 = vmatpush3.bf16.msra.mxu1 %v2545_v63  ;;  %2516 = vmatprep.subr.bf16.mxu0 %v2515_v0  ;;  %v93_v33 = vld [vmem:[%s4730_s1 + $0x178] sm:$0xff]  ;;  %v127_v35 = vld [vmem:[%s4730_s1 + $0x288] sm:$0xff]  ;;  %v158_v36 = vld [vmem:[%s4730_s1 + $0x380] sm:$0xff]  ;;  %v2525_v38 = vpack.c.bf16 %v61_v30, %v60_v29 }
  0x18   :  { %2548 = vmatprep.subr.bf16.mxu1 %v2547_v4  ;;  %476 = vmatprep.mubr.f32.mxu0 %v392_v22  ;;  %v159_v37 = vld [vmem:[%s4730_s1 + $0x388] sm:$0xff]  ;;  %v2557_v39 = vpack.c.bf16 %v93_v33, %v92_v31  ;;  %v2559_v40 = vpack.c.bf16 %v127_v35, %v126_v34  ;;  %v110_v41 = vld [vmem:[%s4730_s1 + $0x200] sm:$0xff]  ;;  %v128_v46 = vld [vmem:[%s4730_s1 + $0x290] sm:$0xff] }
  0x19   :  { %546 = vmatprep.mubr.f32.mxu1 %v393_v23  ;;  %v111_v42 = vld [vmem:[%s4730_s1 + $0x208] sm:$0xff]  ;;  %v142_v43 = vld [vmem:[%s4730_s1 + $0x300] sm:$0xff]  ;;  %v2591_v44 = vpack.c.bf16 %v159_v37, %v158_v36  ;;  %v129_v47 = vld [vmem:[%s4730_s1 + $0x298] sm:$0xff] }
  0x1a   :  { %2518 = vmatpush3.bf16.msra.mxu0 %v2517_v10  ;;  %v143_v45 = vld [vmem:[%s4730_s1 + $0x308] sm:$0xff]  ;;  %v160_v48 = vld [vmem:[%s4730_s1 + $0x390] sm:$0xff]  ;;  %v161_v49 = vld [vmem:[%s4730_s1 + $0x398] sm:$0xff]  ;;  %v2561_v50 = vpack.c.bf16 %v111_v42, %v110_v41  ;;  %v2563_v52 = vpack.c.bf16 %v129_v47, %v128_v46 }
  0x1b   :  { %2550 = vmatpush3.bf16.msra.mxu1 %v2549_v13  ;;  %2520 = vmatprep.subr.bf16.mxu0 %v2519_v14  ;;  %v2593_v51 = vpack.c.bf16 %v143_v45, %v142_v43  ;;  %v112_v53 = vld [vmem:[%s4730_s1 + $0x210] sm:$0xff]  ;;  %v113_v54 = vld [vmem:[%s4730_s1 + $0x218] sm:$0xff]  ;;  %v2595_v56 = vpack.c.bf16 %v161_v49, %v160_v48  ;;  %v130_v58 = vld [vmem:[%s4730_s1 + $0x2a0] sm:$0xff] }
  0x1c   :  { %2552 = vmatprep.subr.bf16.mxu1 %v2551_v18  ;;  %v144_v55 = vld [vmem:[%s4730_s1 + $0x310] sm:$0xff]  ;;  %v145_v57 = vld [vmem:[%s4730_s1 + $0x318] sm:$0xff]  ;;  %v131_v59 = vld [vmem:[%s4730_s1 + $0x2a8] sm:$0xff]  ;;  %v2565_v62 = vpack.c.bf16 %v113_v54, %v112_v53 }
  0x1d   :  { %v162_v60 = vld [vmem:[%s4730_s1 + $0x3a0] sm:$0xff]  ;;  %v163_v61 = vld [vmem:[%s4730_s1 + $0x3a8] sm:$0xff]  ;;  %v2597_v63 = vpack.c.bf16 %v145_v57, %v144_v55  ;;  %v2567_v0 = vpack.c.bf16 %v131_v59, %v130_v58  ;;  %v132_v6 = vld [vmem:[%s4730_s1 + $0x2b0] sm:$0xff] }
  0x1e   :  { %2522 = vmatpush3.bf16.msra.mxu0 %v2521_v26  ;;  %v114_v1 = vld [vmem:[%s4730_s1 + $0x220] sm:$0xff]  ;;  %v115_v2 = vld [vmem:[%s4730_s1 + $0x228] sm:$0xff]  ;;  %v2599_v4 = vpack.c.bf16 %v163_v61, %v162_v60  ;;  %v133_v7 = vld [vmem:[%s4730_s1 + $0x2b8] sm:$0xff] }
  0x1f   :  { %2554 = vmatpush3.bf16.msra.mxu1 %v2553_v27  ;;  %2524 = vmatprep.subr.bf16.mxu0 %v2523_v28  ;;  %v146_v3 = vld [vmem:[%s4730_s1 + $0x320] sm:$0xff]  ;;  %v147_v5 = vld [vmem:[%s4730_s1 + $0x328] sm:$0xff]  ;;  %v164_v8 = vld [vmem:[%s4730_s1 + $0x3b0] sm:$0xff]  ;;  %v2569_v10 = vpack.c.bf16 %v115_v2, %v114_v1  ;;  %v2571_v13 = vpack.c.bf16 %v133_v7, %v132_v6 }
  0x20   :  { %2556 = vmatprep.subr.bf16.mxu1 %v2555_v32  ;;  %v165_v9 = vld [vmem:[%s4730_s1 + $0x3b8] sm:$0xff]  ;;  %v116_v11 = vld [vmem:[%s4730_s1 + $0x230] sm:$0xff]  ;;  %v2601_v12 = vpack.c.bf16 %v147_v5, %v146_v3  ;;  %v134_v18 = vld [vmem:[%s4730_s1 + $0x2c0] sm:$0xff] }
  0x21   :  { %v117_v14 = vld [vmem:[%s4730_s1 + $0x238] sm:$0xff]  ;;  %v148_v15 = vld [vmem:[%s4730_s1 + $0x330] sm:$0xff]  ;;  %v135_v19 = vld [vmem:[%s4730_s1 + $0x2c8] sm:$0xff] }
  0x22   :  { %2526 = vmatpush3.bf16.msra.mxu0 %v2525_v38  ;;  %v3396_v20 = vld [vmem:[%s4731_s0 + $0x10] sm:$0xff]  ;;  %v166_v21 = vld [vmem:[%s4730_s1 + $0x3c0] sm:$0xff]  ;;  %v167_v22 = vld [vmem:[%s4730_s1 + $0x3c8] sm:$0xff]  ;;  %v2573_v24 = vpack.c.bf16 %v117_v14, %v116_v11  ;;  %v2575_v27 = vpack.c.bf16 %v135_v19, %v134_v18 }
  0x23   :  { %2558 = vmatpush3.bf16.msra.mxu1 %v2557_v39  ;;  %2560 = vmatprep.subr.bf16.mxu0 %v2559_v40  ;;  %v394_v23 = vcombine.high %v3396_v20, %v3396_v20  ;;  %v3409_v25 = vld [vmem:[%s4731_s0 + $0x18] sm:$0xff]  ;;  %v118_v28 = vld [vmem:[%s4730_s1 + $0x240] sm:$0xff]  ;;  %v119_v29 = vld [vmem:[%s4730_s1 + $0x248] sm:$0xff]  ;;  %v2607_v32 = vpack.c.bf16 %v167_v22, %v166_v21 }
  0x24   :  { %2592 = vmatprep.subr.bf16.mxu1 %v2591_v44  ;;  %v150_v30 = vld [vmem:[%s4730_s1 + $0x340] sm:$0xff]  ;;  %v395_v31 = vcombine.high %v3409_v25, %v3409_v25  ;;  %v151_v33 = vld [vmem:[%s4730_s1 + $0x348] sm:$0xff]  ;;  %v136_v34 = vld [vmem:[%s4730_s1 + $0x2d0] sm:$0xff]  ;;  %v2577_v38 = vpack.c.bf16 %v119_v29, %v118_v28 }
  0x25   :  { %477 = vmatmul.mubr.f32.vlgmr.msra.gmra.mrb[0].mxu0 %v35_v16  ;;  %v149_v16 = vld [vmem:[%s4730_s1 + $0x338] sm:$0xff]  ;;  %v168_v36 = vld [vmem:[%s4730_s1 + $0x3d0] sm:$0xff]  ;;  %v2609_v39 = vpack.c.bf16 %v151_v33, %v150_v30  ;;  %v138_v46 = vld [vmem:[%s4730_s1 + $0x2e0] sm:$0xff] }
  0x26   :  { %547 = vmatmul.mubr.f32.vlgmr.msra.gmra.mrb[0].mxu1 %v36_v17  ;;  %2562 = vmatpush3.bf16.msra.mxu0 %v2561_v50  ;;  %v2603_v17 = vpack.c.bf16 %v165_v9, %v164_v8  ;;  %v2605_v26 = vpack.c.bf16 %v149_v16, %v148_v15  ;;  %v137_v35 = vld [vmem:[%s4730_s1 + $0x2d8] sm:$0xff]  ;;  %v120_v41 = vld [vmem:[%s4730_s1 + $0x250] sm:$0xff]  ;;  %v139_v47 = vld [vmem:[%s4730_s1 + $0x2e8] sm:$0xff] }
  0x27   :  { %2594 = vmatpush3.bf16.msra.mxu1 %v2593_v51  ;;  %2564 = vmatprep.subr.bf16.mxu0 %v2563_v52  ;;  %v169_v37 = vld [vmem:[%s4730_s1 + $0x3d8] sm:$0xff]  ;;  %v2579_v40 = vpack.c.bf16 %v137_v35, %v136_v34  ;;  %v152_v43 = vld [vmem:[%s4730_s1 + $0x350] sm:$0xff]  ;;  %v170_v48 = vld [vmem:[%s4730_s1 + $0x3e0] sm:$0xff]  ;;  %v2583_v52 = vpack.c.bf16 %v139_v47, %v138_v46 }
  0x28   :  { %2596 = vmatprep.subr.bf16.mxu1 %v2595_v56  ;;  %616 = vmatprep.mubr.f32.mxu0 %v394_v23  ;;  %v121_v42 = vld [vmem:[%s4730_s1 + $0x258] sm:$0xff]  ;;  %v2611_v44 = vpack.c.bf16 %v169_v37, %v168_v36  ;;  %v171_v49 = vld [vmem:[%s4730_s1 + $0x3e8] sm:$0xff]  ;;  %v122_v53 = vld [vmem:[%s4730_s1 + $0x260] sm:$0xff] }
  0x29   :  { %686 = vmatprep.mubr.f32.mxu1 %v395_v31  ;;  %v153_v45 = vld [vmem:[%s4730_s1 + $0x358] sm:$0xff]  ;;  %v2581_v50 = vpack.c.bf16 %v121_v42, %v120_v41  ;;  %v123_v54 = vld [vmem:[%s4730_s1 + $0x268] sm:$0xff]  ;;  %v154_v55 = vld [vmem:[%s4730_s1 + $0x360] sm:$0xff]  ;;  %v2615_v56 = vpack.c.bf16 %v171_v49, %v170_v48 }
  0x2a   :  { %2566 = vmatpush3.bf16.msra.mxu0 %v2565_v62  ;;  %v2613_v51 = vpack.c.bf16 %v153_v45, %v152_v43  ;;  %v155_v57 = vld [vmem:[%s4730_s1 + $0x368] sm:$0xff]  ;;  %v140_v58 = vld [vmem:[%s4730_s1 + $0x2f0] sm:$0xff]  ;;  %v141_v59 = vld [vmem:[%s4730_s1 + $0x2f8] sm:$0xff]  ;;  %v2585_v62 = vpack.c.bf16 %v123_v54, %v122_v53 }
  0x2b   :  { %2598 = vmatpush3.bf16.msra.mxu1 %v2597_v63  ;;  %2568 = vmatprep.subr.bf16.mxu0 %v2567_v0  ;;  %v172_v60 = vld [vmem:[%s4730_s1 + $0x3f0] sm:$0xff]  ;;  %v173_v61 = vld [vmem:[%s4730_s1 + $0x3f8] sm:$0xff]  ;;  %v2617_v63 = vpack.c.bf16 %v155_v57, %v154_v55  ;;  %v2587_v0 = vpack.c.bf16 %v141_v59, %v140_v58  ;;  %v190_v6 = vld [vmem:[%s4730_s1 + $0x480] sm:$0xff] }
  0x2c   :  { %2600 = vmatprep.subr.bf16.mxu1 %v2599_v4  ;;  %v124_v1 = vld [vmem:[%s4730_s1 + $0x270] sm:$0xff]  ;;  %v125_v2 = vld [vmem:[%s4730_s1 + $0x278] sm:$0xff]  ;;  %v2619_v4 = vpack.c.bf16 %v173_v61, %v172_v60  ;;  %v191_v7 = vld [vmem:[%s4730_s1 + $0x488] sm:$0xff] }
  0x2d   :  { %v156_v3 = vld [vmem:[%s4730_s1 + $0x370] sm:$0xff]  ;;  %v157_v5 = vld [vmem:[%s4730_s1 + $0x378] sm:$0xff]  ;;  %v222_v8 = vld [vmem:[%s4730_s1 + $0x580] sm:$0xff] }
  0x2e   :  { %2570 = vmatpush3.bf16.msra.mxu0 %v2569_v10  ;;  %v223_v9 = vld [vmem:[%s4730_s1 + $0x588] sm:$0xff]  ;;  %v2589_v10 = vpack.c.bf16 %v125_v2, %v124_v1  ;;  %v2621_v11 = vpack.c.bf16 %v157_v5, %v156_v3  ;;  %v206_v15 = vld [vmem:[%s4730_s1 + $0x500] sm:$0xff]  ;;  %v192_v18 = vld [vmem:[%s4730_s1 + $0x490] sm:$0xff] }
  0x2f   :  { %2602 = vmatpush3.bf16.msra.mxu1 %v2601_v12  ;;  %2572 = vmatprep.subr.bf16.mxu0 %v2571_v13  ;;  %v2623_v12 = vpack.c.bf16 %v191_v7, %v190_v6  ;;  %v174_v13 = vld [vmem:[%s4730_s1 + $0x400] sm:$0xff]  ;;  %v175_v14 = vld [vmem:[%s4730_s1 + $0x408] sm:$0xff]  ;;  %v2655_v16 = vpack.c.bf16 %v223_v9, %v222_v8  ;;  %v193_v19 = vld [vmem:[%s4730_s1 + $0x498] sm:$0xff] }
  0x30   :  { %2604 = vmatprep.subr.bf16.mxu1 %v2603_v17  ;;  %v207_v17 = vld [vmem:[%s4730_s1 + $0x508] sm:$0xff]  ;;  %v224_v21 = vld [vmem:[%s4730_s1 + $0x590] sm:$0xff]  ;;  %v225_v22 = vld [vmem:[%s4730_s1 + $0x598] sm:$0xff]  ;;  %v2625_v23 = vpack.c.bf16 %v175_v14, %v174_v13  ;;  %v2627_v28 = vpack.c.bf16 %v193_v19, %v192_v18 }
  0x31   :  { %v177_v29 = vld [vmem:[%s4730_s1 + $0x418] sm:$0xff]  ;;  %v208_v30 = vld [vmem:[%s4730_s1 + $0x510] sm:$0xff]  ;;  %v194_v33 = vld [vmem:[%s4730_s1 + $0x4a0] sm:$0xff] }
  0x32   :  { %2574 = vmatpush3.bf16.msra.mxu0 %v2573_v24  ;;  %v176_v24 = vld [vmem:[%s4730_s1 + $0x410] sm:$0xff]  ;;  %v209_v31 = vld [vmem:[%s4730_s1 + $0x518] sm:$0xff]  ;;  %v195_v34 = vld [vmem:[%s4730_s1 + $0x4a8] sm:$0xff] }
  0x33   :  { %2606 = vmatpush3.bf16.msra.mxu1 %v2605_v26  ;;  %2576 = vmatprep.subr.bf16.mxu0 %v2575_v27  ;;  %v3539_v26 = vld [vmem:[%s4731_s0 + $0x20] sm:$0xff]  ;;  %v2657_v27 = vpack.c.bf16 %v207_v17, %v206_v15  ;;  %v3561_v36 = vld [vmem:[%s4731_s0 + $0x28] sm:$0xff]  ;;  %v2661_v41 = vpack.c.bf16 %v209_v31, %v208_v30  ;;  %v2631_v42 = vpack.c.bf16 %v195_v34, %v194_v33  ;;  %v196_v46 = vld [vmem:[%s4730_s1 + $0x4b0] sm:$0xff] }
  0x34   :  { %2608 = vmatprep.subr.bf16.mxu1 %v2607_v32  ;;  %v2659_v32 = vpack.c.bf16 %v225_v22, %v224_v21  ;;  %v396_v35 = vcombine.high %v3539_v26, %v3539_v26  ;;  %v226_v37 = vld [vmem:[%s4730_s1 + $0x5a0] sm:$0xff]  ;;  %v179_v43 = vld [vmem:[%s4730_s1 + $0x428] sm:$0xff]  ;;  %v197_v47 = vld [vmem:[%s4730_s1 + $0x4b8] sm:$0xff] }
  0x35   :  { %v228_v48 = vld [vmem:[%s4730_s1 + $0x5b0] sm:$0xff]  ;;  %v229_v49 = vld [vmem:[%s4730_s1 + $0x5b8] sm:$0xff]  ;;  %v198_v58 = vld [vmem:[%s4730_s1 + $0x4c0] sm:$0xff] }
  0x36   :  { %2578 = vmatpush3.bf16.msra.mxu0 %v2577_v38  ;;  %v227_v38 = vld [vmem:[%s4730_s1 + $0x5a8] sm:$0xff]  ;;  %v180_v53 = vld [vmem:[%s4730_s1 + $0x430] sm:$0xff]  ;;  %v181_v54 = vld [vmem:[%s4730_s1 + $0x438] sm:$0xff] }
  0x37   :  { %2610 = vmatpush3.bf16.msra.mxu1 %v2609_v39  ;;  %2580 = vmatprep.subr.bf16.mxu0 %v2579_v40  ;;  %v397_v39 = vcombine.high %v3561_v36, %v3561_v36  ;;  %v2629_v40 = vpack.c.bf16 %v177_v29, %v176_v24  ;;  %v2663_v45 = vpack.c.bf16 %v227_v38, %v226_v37  ;;  %v212_v55 = vld [vmem:[%s4730_s1 + $0x530] sm:$0xff]  ;;  %v213_v57 = vld [vmem:[%s4730_s1 + $0x538] sm:$0xff]  ;;  %v199_v59 = vld [vmem:[%s4730_s1 + $0x4c8] sm:$0xff] }
  0x38   :  { %2612 = vmatprep.subr.bf16.mxu1 %v2611_v44  ;;  %v210_v44 = vld [vmem:[%s4730_s1 + $0x520] sm:$0xff]  ;;  %v231_v61 = vld [vmem:[%s4730_s1 + $0x5c8] sm:$0xff]  ;;  %v200_v6 = vld [vmem:[%s4730_s1 + $0x4d0] sm:$0xff] }
  0x39   :  { %v230_v60 = vld [vmem:[%s4730_s1 + $0x5c0] sm:$0xff]  ;;  %v183_v2 = vld [vmem:[%s4730_s1 + $0x448] sm:$0xff]  ;;  %v201_v7 = vld [vmem:[%s4730_s1 + $0x4d8] sm:$0xff] }
  0x3a   :  { %2582 = vmatpush3.bf16.msra.mxu0 %v2581_v50  ;;  %v182_v1 = vld [vmem:[%s4730_s1 + $0x440] sm:$0xff]  ;;  %v215_v5 = vld [vmem:[%s4730_s1 + $0x548] sm:$0xff]  ;;  %v232_v8 = vld [vmem:[%s4730_s1 + $0x5d0] sm:$0xff] }
  0x3b   :  { %2614 = vmatpush3.bf16.msra.mxu1 %v2613_v51  ;;  %2584 = vmatprep.subr.bf16.mxu0 %v2583_v52  ;;  %v2635_v52 = vpack.c.bf16 %v197_v47, %v196_v46  ;;  %v214_v3 = vld [vmem:[%s4730_s1 + $0x540] sm:$0xff]  ;;  %v233_v9 = vld [vmem:[%s4730_s1 + $0x5d8] sm:$0xff]  ;;  %v184_v13 = vld [vmem:[%s4730_s1 + $0x450] sm:$0xff] }
  0x3c   :  { %2616 = vmatprep.subr.bf16.mxu1 %v2615_v56  ;;  %v2667_v56 = vpack.c.bf16 %v229_v49, %v228_v48  ;;  %v185_v14 = vld [vmem:[%s4730_s1 + $0x458] sm:$0xff]  ;;  %v216_v15 = vld [vmem:[%s4730_s1 + $0x550] sm:$0xff]  ;;  %v202_v18 = vld [vmem:[%s4730_s1 + $0x4e0] sm:$0xff] }
  0x3d   :  { %v217_v17 = vld [vmem:[%s4730_s1 + $0x558] sm:$0xff]  ;;  %v203_v19 = vld [vmem:[%s4730_s1 + $0x4e8] sm:$0xff]  ;;  %v234_v21 = vld [vmem:[%s4730_s1 + $0x5e0] sm:$0xff] }
  0x3e   :  { %2586 = vmatpush3.bf16.msra.mxu0 %v2585_v62  ;;  %v2637_v62 = vpack.c.bf16 %v181_v54, %v180_v53  ;;  %v235_v22 = vld [vmem:[%s4730_s1 + $0x5e8] sm:$0xff]  ;;  %v2677_v24 = vpack.c.bf16 %v217_v17, %v216_v15  ;;  %v218_v30 = vld [vmem:[%s4730_s1 + $0x560] sm:$0xff]  ;;  %v204_v33 = vld [vmem:[%s4730_s1 + $0x4f0] sm:$0xff] }
  0x3f   :  { %2618 = vmatpush3.bf16.msra.mxu1 %v2617_v63  ;;  %2588 = vmatprep.subr.bf16.mxu0 %v2587_v0  ;;  %v2669_v63 = vpack.c.bf16 %v213_v57, %v212_v55  ;;  %v2639_v0 = vpack.c.bf16 %v199_v59, %v198_v58  ;;  %v187_v29 = vld [vmem:[%s4730_s1 + $0x468] sm:$0xff]  ;;  %v2679_v31 = vpack.c.bf16 %v235_v22, %v234_v21  ;;  %v205_v34 = vld [vmem:[%s4730_s1 + $0x4f8] sm:$0xff]  ;;  %v286_v46 = vld [vmem:[%s4730_s1 + $0x780] sm:$0xff] }
  0x40   :  { %2620 = vmatprep.subr.bf16.mxu1 %v2619_v4  ;;  %v2671_v4 = vpack.c.bf16 %v231_v61, %v230_v60  ;;  %v237_v37 = vld [vmem:[%s4730_s1 + $0x5f8] sm:$0xff]  ;;  %v287_v47 = vld [vmem:[%s4730_s1 + $0x788] sm:$0xff]  ;;  %v270_v53 = vld [vmem:[%s4730_s1 + $0x700] sm:$0xff] }
  0x41   :  { %v2719_v54 = vpack.c.bf16 %v287_v47, %v286_v46  ;;  %v271_v55 = vld [vmem:[%s4730_s1 + $0x708] sm:$0xff]  ;;  %v257_v57 = vld [vmem:[%s4730_s1 + $0x698] sm:$0xff]  ;;  %v288_v58 = vld [vmem:[%s4730_s1 + $0x790] sm:$0xff] }
  0x42   :  { %2590 = vmatpush3.bf16.msra.mxu0 %v2589_v10  ;;  %v2641_v10 = vpack.c.bf16 %v183_v2, %v182_v1  ;;  %v289_v59 = vld [vmem:[%s4730_s1 + $0x798] sm:$0xff]  ;;  %v3744_v60 = vld [vmem:[%s4731_s0 + $0x30] sm:$0xff]  ;;  %v243_v15 = vld [vmem:[%s4730_s1 + $0x628] sm:$0xff] }
  0x43   :  { %2622 = vmatpush3.bf16.msra.mxu1 %v2621_v11  ;;  %2624 = vmatprep.subr.bf16.mxu0 %v2623_v12  ;;  %v2673_v11 = vpack.c.bf16 %v215_v5, %v214_v3  ;;  %v2643_v12 = vpack.c.bf16 %v201_v7, %v200_v6  ;;  %v240_v1 = vld [vmem:[%s4730_s1 + $0x610] sm:$0xff]  ;;  %v241_v2 = vld [vmem:[%s4730_s1 + $0x618] sm:$0xff]  ;;  %v258_v6 = vld [vmem:[%s4730_s1 + $0x6a0] sm:$0xff] }
  0x44   :  { %2656 = vmatprep.subr.bf16.mxu1 %v2655_v16  ;;  %v2675_v16 = vpack.c.bf16 %v233_v9, %v232_v8  ;;  %v272_v3 = vld [vmem:[%s4730_s1 + $0x710] sm:$0xff]  ;;  %v273_v5 = vld [vmem:[%s4730_s1 + $0x718] sm:$0xff]  ;;  %v259_v7 = vld [vmem:[%s4730_s1 + $0x6a8] sm:$0xff]  ;;  %v398_v8 = vcombine.high %v3744_v60, %v3744_v60 }
  0x45   :  { %617 = vmatmul.mubr.f32.vlgmr.msra.gmra.mrb[2].mxu0 %v3396_v20  ;;  %v178_v20 = vld [vmem:[%s4730_s1 + $0x420] sm:$0xff]  ;;  %v292_v21 = vld [vmem:[%s4730_s1 + $0x7b0] sm:$0xff]  ;;  %v293_v22 = vld [vmem:[%s4730_s1 + $0x7b8] sm:$0xff] }
  0x46   :  { %2626 = vmatpush3.bf16.msra.mxu0 %v2625_v23  ;;  %687 = vmatmul.mubr.f32.vlgmr.msra.gmra.mrb[2].mxu1 %v3409_v25  ;;  %v211_v25 = vld [vmem:[%s4730_s1 + $0x528] sm:$0xff]  ;;  %v2633_v50 = vpack.c.bf16 %v179_v43, %v178_v20  ;;  %v2645_v23 = vpack.c.bf16 %v185_v14, %v184_v13  ;;  %v220_v20 = vld [vmem:[%s4730_s1 + $0x570] sm:$0xff]  ;;  %v290_v9 = vld [vmem:[%s4730_s1 + $0x7a0] sm:$0xff]  ;;  %v2725_v13 = vpack.c.bf16 %v273_v5, %v272_v3 }
  0x47   :  { %2658 = vmatpush3.bf16.msra.mxu1 %v2657_v27  ;;  %2628 = vmatprep.subr.bf16.mxu0 %v2627_v28  ;;  %v2665_v51 = vpack.c.bf16 %v211_v25, %v210_v44  ;;  %v2647_v27 = vpack.c.bf16 %v203_v19, %v202_v18  ;;  %v186_v28 = vld [vmem:[%s4730_s1 + $0x460] sm:$0xff]  ;;  %v221_v44 = vld [vmem:[%s4730_s1 + $0x578] sm:$0xff]  ;;  %v255_v25 = vld [vmem:[%s4730_s1 + $0x688] sm:$0xff]  ;;  %v2695_v14 = vpack.c.bf16 %v259_v7, %v258_v6 }
  0x48   :  { %2660 = vmatprep.subr.bf16.mxu1 %v2659_v32  ;;  %756 = vmatprep.mubr.f32.mxu0 %v396_v35  ;;  %v219_v32 = vld [vmem:[%s4730_s1 + $0x568] sm:$0xff]  ;;  %v236_v35 = vld [vmem:[%s4730_s1 + $0x5f0] sm:$0xff]  ;;  %v2649_v38 = vpack.c.bf16 %v187_v29, %v186_v28  ;;  %v2685_v49 = vpack.c.bf16 %v221_v44, %v220_v20  ;;  %v261_v19 = vld [vmem:[%s4730_s1 + $0x6b8] sm:$0xff] }
  0x49   :  { %826 = vmatprep.mubr.f32.mxu1 %v397_v39  ;;  %v2681_v39 = vpack.c.bf16 %v219_v32, %v218_v30  ;;  %v2683_v43 = vpack.c.bf16 %v237_v37, %v236_v35  ;;  %v260_v18 = vld [vmem:[%s4730_s1 + $0x6b0] sm:$0xff]  ;;  %v245_v29 = vld [vmem:[%s4730_s1 + $0x638] sm:$0xff]  ;;  %v294_v35 = vld [vmem:[%s4730_s1 + $0x7c0] sm:$0xff] }
  0x4a   :  { %2630 = vmatpush3.bf16.msra.mxu0 %v2629_v40  ;;  %v2651_v40 = vpack.c.bf16 %v205_v34, %v204_v33  ;;  %v244_v28 = vld [vmem:[%s4730_s1 + $0x630] sm:$0xff]  ;;  %v277_v32 = vld [vmem:[%s4730_s1 + $0x738] sm:$0xff]  ;;  %v262_v33 = vld [vmem:[%s4730_s1 + $0x6c0] sm:$0xff] }
  0x4b   :  { %2662 = vmatpush3.bf16.msra.mxu1 %v2661_v41  ;;  %2632 = vmatprep.subr.bf16.mxu0 %v2631_v42  ;;  %v188_v41 = vld [vmem:[%s4730_s1 + $0x470] sm:$0xff]  ;;  %v189_v42 = vld [vmem:[%s4730_s1 + $0x478] sm:$0xff]  ;;  %v263_v34 = vld [vmem:[%s4730_s1 + $0x6c8] sm:$0xff] }
  0x4c   :  { %2664 = vmatprep.subr.bf16.mxu1 %v2663_v45  ;;  %v254_v45 = vld [vmem:[%s4730_s1 + $0x680] sm:$0xff]  ;;  %v2653_v48 = vpack.c.bf16 %v189_v42, %v188_v41  ;;  %v276_v30 = vld [vmem:[%s4730_s1 + $0x730] sm:$0xff]  ;;  %v295_v37 = vld [vmem:[%s4730_s1 + $0x7c8] sm:$0xff] }
  0x4d   :  { %v246_v41 = vld [vmem:[%s4730_s1 + $0x640] sm:$0xff]  ;;  %v247_v42 = vld [vmem:[%s4730_s1 + $0x648] sm:$0xff]  ;;  %v296_v46 = vld [vmem:[%s4730_s1 + $0x7d0] sm:$0xff] }
  0x4e   :  { %2634 = vmatpush3.bf16.msra.mxu0 %v2633_v50  ;;  %v2687_v50 = vpack.c.bf16 %v255_v25, %v254_v45  ;;  %v278_v20 = vld [vmem:[%s4730_s1 + $0x740] sm:$0xff]  ;;  %v279_v44 = vld [vmem:[%s4730_s1 + $0x748] sm:$0xff]  ;;  %v264_v45 = vld [vmem:[%s4730_s1 + $0x6d0] sm:$0xff] }
  0x4f   :  { %2666 = vmatpush3.bf16.msra.mxu1 %v2665_v51  ;;  %2636 = vmatprep.subr.bf16.mxu0 %v2635_v52  ;;  %v238_v51 = vld [vmem:[%s4730_s1 + $0x600] sm:$0xff]  ;;  %v239_v52 = vld [vmem:[%s4730_s1 + $0x608] sm:$0xff]  ;;  %v265_v25 = vld [vmem:[%s4730_s1 + $0x6d8] sm:$0xff] }
  0x50   :  { %2668 = vmatprep.subr.bf16.mxu1 %v2667_v56  ;;  %v256_v56 = vld [vmem:[%s4730_s1 + $0x690] sm:$0xff]  ;;  %v2689_v61 = vpack.c.bf16 %v239_v52, %v238_v51  ;;  %v297_v47 = vld [vmem:[%s4730_s1 + $0x7d8] sm:$0xff]  ;;  %v282_v3 = vld [vmem:[%s4730_s1 + $0x760] sm:$0xff] }
  0x51   :  { %v248_v51 = vld [vmem:[%s4730_s1 + $0x650] sm:$0xff]  ;;  %v249_v52 = vld [vmem:[%s4730_s1 + $0x658] sm:$0xff]  ;;  %v283_v5 = vld [vmem:[%s4730_s1 + $0x768] sm:$0xff] }
  0x52   :  { %2638 = vmatpush3.bf16.msra.mxu0 %v2637_v62  ;;  %v3749_v62 = vld [vmem:[%s4731_s0 + $0x38] sm:$0xff]  ;;  %v268_v6 = vld [vmem:[%s4730_s1 + $0x6f0] sm:$0xff]  ;;  %vm3014_vm10 = vmpackc.low %vm1893_vm8, %vm3037_vm9 }
  0x53   :  { %2670 = vmatpush3.bf16.msra.mxu1 %v2669_v63  ;;  %2640 = vmatprep.subr.bf16.mxu0 %v2639_v0  ;;  %v2721_v63 = vpack.c.bf16 %v271_v55, %v270_v53  ;;  %v2691_v0 = vpack.c.bf16 %v257_v57, %v256_v56  ;;  %v280_v53 = vld [vmem:[%s4730_s1 + $0x750] sm:$0xff]  ;;  %v281_v55 = vld [vmem:[%s4730_s1 + $0x758] sm:$0xff]  ;;  %v266_v56 = vld [vmem:[%s4730_s1 + $0x6e0] sm:$0xff] }
  0x54   :  { %2672 = vmatprep.subr.bf16.mxu1 %v2671_v4  ;;  %v2723_v4 = vpack.c.bf16 %v289_v59, %v288_v58  ;;  %v267_v57 = vld [vmem:[%s4730_s1 + $0x6e8] sm:$0xff]  ;;  %v298_v58 = vld [vmem:[%s4730_s1 + $0x7e0] sm:$0xff]  ;;  %v269_v7 = vld [vmem:[%s4730_s1 + $0x6f8] sm:$0xff] }
  0x55   :  { %v299_v59 = vld [vmem:[%s4730_s1 + $0x7e8] sm:$0xff] }
  0x56   :  { %2642 = vmatpush3.bf16.msra.mxu0 %v2641_v10  ;;  %v291_v10 = vld [vmem:[%s4730_s1 + $0x7a8] sm:$0xff] }
  0x57   :  { %2674 = vmatpush3.bf16.msra.mxu1 %v2673_v11  ;;  %2644 = vmatprep.subr.bf16.mxu0 %v2643_v12  ;;  %v399_v11 = vcombine.high %v3749_v62, %v3749_v62  ;;  %v2693_v12 = vpack.c.bf16 %v241_v2, %v240_v1  ;;  %v2727_v17 = vpack.c.bf16 %v291_v10, %v290_v9  ;;  %v250_v1 = vld [vmem:[%s4730_s1 + $0x660] sm:$0xff]  ;;  %v251_v2 = vld [vmem:[%s4730_s1 + $0x668] sm:$0xff]  ;;  %v301_v9 = vld [vmem:[%s4730_s1 + $0x7f8] sm:$0xff] }
  0x58   :  { %2676 = vmatprep.subr.bf16.mxu1 %v2675_v16  ;;  %v274_v16 = vld [vmem:[%s4730_s1 + $0x720] sm:$0xff]  ;;  %v2713_v10 = vpack.c.bf16 %v251_v2, %v250_v1  ;;  %v308_v1 = vld [vmem:[%s4730_s1 + $0x830] sm:$0xff]  ;;  %v309_v2 = vld [vmem:[%s4730_s1 + $0x838] sm:$0xff] }
  0x5a   :  { %2646 = vmatpush3.bf16.msra.mxu0 %v2645_v23 }
  0x5b   :  { %2678 = vmatpush3.bf16.msra.mxu1 %v2677_v24  ;;  %2648 = vmatprep.subr.bf16.mxu0 %v2647_v27  ;;  %v2699_v27 = vpack.c.bf16 %v261_v19, %v260_v18  ;;  %v350_v18 = vld [vmem:[%s4730_s1 + $0x980] sm:$0xff]  ;;  %v351_v19 = vld [vmem:[%s4730_s1 + $0x988] sm:$0xff] }
  0x5c   :  { %2680 = vmatprep.subr.bf16.mxu1 %v2679_v31  ;;  %v2731_v31 = vpack.c.bf16 %v293_v22, %v292_v21 }
  0x5e   :  { %2650 = vmatpush3.bf16.msra.mxu0 %v2649_v38  ;;  %v2701_v38 = vpack.c.bf16 %v245_v29, %v244_v28  ;;  %v334_v28 = vld [vmem:[%s4730_s1 + $0x900] sm:$0xff]  ;;  %v2783_v29 = vpack.c.bf16 %v351_v19, %v350_v18  ;;  %v360_v18 = vld [vmem:[%s4730_s1 + $0x9d0] sm:$0xff]  ;;  %v361_v19 = vld [vmem:[%s4730_s1 + $0x9d8] sm:$0xff] }
  0x5f   :  { %2682 = vmatpush3.bf16.msra.mxu1 %v2681_v39  ;;  %2652 = vmatprep.subr.bf16.mxu0 %v2651_v40  ;;  %v2733_v39 = vpack.c.bf16 %v277_v32, %v276_v30  ;;  %v2703_v40 = vpack.c.bf16 %v263_v34, %v262_v33  ;;  %v335_v30 = vld [vmem:[%s4730_s1 + $0x908] sm:$0xff]  ;;  %v321_v32 = vld [vmem:[%s4730_s1 + $0x898] sm:$0xff]  ;;  %v352_v33 = vld [vmem:[%s4730_s1 + $0x990] sm:$0xff] }
  0x60   :  { %2684 = vmatprep.subr.bf16.mxu1 %v2683_v43  ;;  %v2735_v43 = vpack.c.bf16 %v295_v37, %v294_v35  ;;  %v353_v34 = vld [vmem:[%s4730_s1 + $0x998] sm:$0xff]  ;;  %v3952_v35 = vld [vmem:[%s4731_s0 + $0x40] sm:$0xff] }
  0x62   :  { %2654 = vmatpush3.bf16.msra.mxu0 %v2653_v48  ;;  %v2705_v48 = vpack.c.bf16 %v247_v42, %v246_v41  ;;  %v304_v41 = vld [vmem:[%s4730_s1 + $0x810] sm:$0xff]  ;;  %v305_v42 = vld [vmem:[%s4730_s1 + $0x818] sm:$0xff] }
  0x63   :  { %2686 = vmatpush3.bf16.msra.mxu1 %v2685_v49  ;;  %2688 = vmatprep.subr.bf16.mxu0 %v2687_v50  ;;  %v2737_v49 = vpack.c.bf16 %v279_v44, %v278_v20  ;;  %v2707_v50 = vpack.c.bf16 %v265_v25, %v264_v45  ;;  %v336_v20 = vld [vmem:[%s4730_s1 + $0x910] sm:$0xff]  ;;  %v337_v44 = vld [vmem:[%s4730_s1 + $0x918] sm:$0xff]  ;;  %v322_v45 = vld [vmem:[%s4730_s1 + $0x8a0] sm:$0xff] }
  0x64   :  { %2720 = vmatprep.subr.bf16.mxu1 %v2719_v54  ;;  %v2739_v54 = vpack.c.bf16 %v297_v47, %v296_v46  ;;  %v323_v25 = vld [vmem:[%s4730_s1 + $0x8a8] sm:$0xff]  ;;  %v400_v46 = vcombine.high %v3952_v35, %v3952_v35  ;;  %v354_v47 = vld [vmem:[%s4730_s1 + $0x9a0] sm:$0xff] }
  0x65   :  { %757 = vmatmul.mubr.f32.vlgmr.msra.gmra.mrb[4].mxu0 %v3539_v26  ;;  %v242_v26 = vld [vmem:[%s4730_s1 + $0x620] sm:$0xff] }
  0x66   :  { %2690 = vmatpush3.bf16.msra.mxu0 %v2689_v61  ;;  %827 = vmatmul.mubr.f32.vlgmr.msra.gmra.mrb[4].mxu1 %v3561_v36  ;;  %v275_v36 = vld [vmem:[%s4730_s1 + $0x728] sm:$0xff]  ;;  %v2697_v23 = vpack.c.bf16 %v243_v15, %v242_v26  ;;  %v2709_v61 = vpack.c.bf16 %v249_v52, %v248_v51  ;;  %v284_v26 = vld [vmem:[%s4730_s1 + $0x770] sm:$0xff]  ;;  %v2789_v51 = vpack.c.bf16 %v337_v44, %v336_v20  ;;  %v346_v20 = vld [vmem:[%s4730_s1 + $0x960] sm:$0xff] }
  0x67   :  { %2722 = vmatpush3.bf16.msra.mxu1 %v2721_v63  ;;  %2692 = vmatprep.subr.bf16.mxu0 %v2691_v0  ;;  %v2729_v24 = vpack.c.bf16 %v275_v36, %v274_v16  ;;  %v2741_v63 = vpack.c.bf16 %v281_v55, %v280_v53  ;;  %v2711_v0 = vpack.c.bf16 %v267_v57, %v266_v56  ;;  %v285_v16 = vld [vmem:[%s4730_s1 + $0x778] sm:$0xff]  ;;  %v319_v36 = vld [vmem:[%s4730_s1 + $0x888] sm:$0xff]  ;;  %v324_v56 = vld [vmem:[%s4730_s1 + $0x8b0] sm:$0xff] }
  0x68   :  { %2724 = vmatprep.subr.bf16.mxu1 %v2723_v4  ;;  %896 = vmatprep.mubr.f32.mxu0 %v398_v8  ;;  %v2743_v4 = vpack.c.bf16 %v299_v59, %v298_v58  ;;  %v300_v8 = vld [vmem:[%s4730_s1 + $0x7f0] sm:$0xff]  ;;  %v2749_v22 = vpack.c.bf16 %v285_v16, %v284_v26  ;;  %v2759_v52 = vpack.c.bf16 %v323_v25, %v322_v45  ;;  %v307_v53 = vld [vmem:[%s4730_s1 + $0x828] sm:$0xff]  ;;  %v325_v57 = vld [vmem:[%s4730_s1 + $0x8b8] sm:$0xff] }
  0x69   :  { %966 = vmatprep.mubr.f32.mxu1 %v399_v11  ;;  %v2745_v11 = vpack.c.bf16 %v283_v5, %v282_v3  ;;  %v2747_v15 = vpack.c.bf16 %v301_v9, %v300_v8  ;;  %v356_v58 = vld [vmem:[%s4730_s1 + $0x9b0] sm:$0xff]  ;;  %v357_v59 = vld [vmem:[%s4730_s1 + $0x9b8] sm:$0xff]  ;;  %v358_v8 = vld [vmem:[%s4730_s1 + $0x9c0] sm:$0xff] }
  0x6a   :  { %2694 = vmatpush3.bf16.msra.mxu0 %v2693_v12  ;;  %v2715_v12 = vpack.c.bf16 %v269_v7, %v268_v6  ;;  %v340_v3 = vld [vmem:[%s4730_s1 + $0x930] sm:$0xff]  ;;  %v341_v5 = vld [vmem:[%s4730_s1 + $0x938] sm:$0xff]  ;;  %v326_v6 = vld [vmem:[%s4730_s1 + $0x8c0] sm:$0xff] }
  0x6b   :  { %2726 = vmatpush3.bf16.msra.mxu1 %v2725_v13  ;;  %2696 = vmatprep.subr.bf16.mxu0 %v2695_v14  ;;  %v252_v13 = vld [vmem:[%s4730_s1 + $0x670] sm:$0xff]  ;;  %v253_v14 = vld [vmem:[%s4730_s1 + $0x678] sm:$0xff]  ;;  %v327_v7 = vld [vmem:[%s4730_s1 + $0x8c8] sm:$0xff] }
  0x6c   :  { %2728 = vmatprep.subr.bf16.mxu1 %v2727_v17  ;;  %v318_v17 = vld [vmem:[%s4730_s1 + $0x880] sm:$0xff]  ;;  %v2717_v21 = vpack.c.bf16 %v253_v14, %v252_v13  ;;  %v359_v9 = vld [vmem:[%s4730_s1 + $0x9c8] sm:$0xff]  ;;  %v332_v45 = vld [vmem:[%s4730_s1 + $0x8f0] sm:$0xff] }
  0x6d   :  { %v310_v13 = vld [vmem:[%s4730_s1 + $0x840] sm:$0xff]  ;;  %v311_v14 = vld [vmem:[%s4730_s1 + $0x848] sm:$0xff]  ;;  %v333_v25 = vld [vmem:[%s4730_s1 + $0x8f8] sm:$0xff] }
  0x6e   :  { %2698 = vmatpush3.bf16.msra.mxu0 %v2697_v23  ;;  %v2751_v23 = vpack.c.bf16 %v319_v36, %v318_v17  ;;  %v342_v26 = vld [vmem:[%s4730_s1 + $0x940] sm:$0xff]  ;;  %v343_v16 = vld [vmem:[%s4730_s1 + $0x948] sm:$0xff]  ;;  %v328_v17 = vld [vmem:[%s4730_s1 + $0x8d0] sm:$0xff] }
  0x6f   :  { %2730 = vmatpush3.bf16.msra.mxu1 %v2729_v24  ;;  %2700 = vmatprep.subr.bf16.mxu0 %v2699_v27  ;;  %v302_v24 = vld [vmem:[%s4730_s1 + $0x800] sm:$0xff]  ;;  %v303_v27 = vld [vmem:[%s4730_s1 + $0x808] sm:$0xff]  ;;  %v329_v36 = vld [vmem:[%s4730_s1 + $0x8d8] sm:$0xff] }
  0x70   :  { %2732 = vmatprep.subr.bf16.mxu1 %v2731_v31  ;;  %v320_v31 = vld [vmem:[%s4730_s1 + $0x890] sm:$0xff]  ;;  %v2753_v37 = vpack.c.bf16 %v303_v27, %v302_v24  ;;  %v313_v27 = vld [vmem:[%s4730_s1 + $0x858] sm:$0xff]  ;;  %v347_v44 = vld [vmem:[%s4730_s1 + $0x968] sm:$0xff] }
  0x71   :  { %v312_v24 = vld [vmem:[%s4730_s1 + $0x850] sm:$0xff] }
  0x72   :  { %2702 = vmatpush3.bf16.msra.mxu0 %v2701_v38  ;;  %v3957_v38 = vld [vmem:[%s4731_s0 + $0x48] sm:$0xff] }
  0x73   :  { %2734 = vmatpush3.bf16.msra.mxu1 %v2733_v39  ;;  %2704 = vmatprep.subr.bf16.mxu0 %v2703_v40  ;;  %v2785_v39 = vpack.c.bf16 %v335_v30, %v334_v28  ;;  %v2755_v40 = vpack.c.bf16 %v321_v32, %v320_v31  ;;  %v344_v28 = vld [vmem:[%s4730_s1 + $0x950] sm:$0xff]  ;;  %v345_v30 = vld [vmem:[%s4730_s1 + $0x958] sm:$0xff]  ;;  %v330_v31 = vld [vmem:[%s4730_s1 + $0x8e0] sm:$0xff] }
  0x74   :  { %2736 = vmatprep.subr.bf16.mxu1 %v2735_v43  ;;  %v2787_v43 = vpack.c.bf16 %v353_v34, %v352_v33  ;;  %v331_v32 = vld [vmem:[%s4730_s1 + $0x8e8] sm:$0xff]  ;;  %v362_v33 = vld [vmem:[%s4730_s1 + $0x9e0] sm:$0xff] }
  0x75   :  { %v363_v34 = vld [vmem:[%s4730_s1 + $0x9e8] sm:$0xff] }
  0x76   :  { %2706 = vmatpush3.bf16.msra.mxu0 %v2705_v48  ;;  %v355_v48 = vld [vmem:[%s4730_s1 + $0x9a8] sm:$0xff] }
  0x77   :  { %2738 = vmatpush3.bf16.msra.mxu1 %v2737_v49  ;;  %2708 = vmatprep.subr.bf16.mxu0 %v2707_v50  ;;  %v401_v49 = vcombine.high %v3957_v38, %v3957_v38  ;;  %v2757_v50 = vpack.c.bf16 %v305_v42, %v304_v41  ;;  %v2791_v55 = vpack.c.bf16 %v355_v48, %v354_v47  ;;  %v314_v41 = vld [vmem:[%s4730_s1 + $0x860] sm:$0xff]  ;;  %v315_v42 = vld [vmem:[%s4730_s1 + $0x868] sm:$0xff]  ;;  %v365_v47 = vld [vmem:[%s4730_s1 + $0x9f8] sm:$0xff] }
  0x78   :  { %2740 = vmatprep.subr.bf16.mxu1 %v2739_v54  ;;  %v338_v54 = vld [vmem:[%s4730_s1 + $0x920] sm:$0xff]  ;;  %v2777_v48 = vpack.c.bf16 %v315_v42, %v314_v41  ;;  %v1193_v41 = vld [vmem:[%s4732_s2 + $0x48] sm:$0xff] }
  0x79   :  { %v1197_v42 = vld [vmem:[%s4732_s2 + $0x68] sm:$0xff] }
  0x7a   :  { %2710 = vmatpush3.bf16.msra.mxu0 %v2709_v61 }
  0x7b   :  { %2742 = vmatpush3.bf16.msra.mxu1 %v2741_v63  ;;  %2712 = vmatprep.subr.bf16.mxu0 %v2711_v0  ;;  %v2763_v0 = vpack.c.bf16 %v325_v57, %v324_v56  ;;  %v366_v56 = vld [vmem:[%s4730_s1 + $0xa00] sm:$0xff]  ;;  %v367_v57 = vld [vmem:[%s4730_s1 + $0xa08] sm:$0xff] }
  0x7c   :  { %2744 = vmatprep.subr.bf16.mxu1 %v2743_v4  ;;  %v2795_v4 = vpack.c.bf16 %v357_v59, %v356_v58  ;;  %v2816_v58 = vpack.c.bf16 %v367_v57, %v366_v56  ;;  %v3034_v59 = vmov 0.0|0.0   ;;  %v1200_v56 = vld [vmem:[%s4732_s2 + $0x80] sm:$0xff] }
  0x7d   :  { %v1204_v57 = vld [vmem:[%s4732_s2 + $0xa0] sm:$0xff] }
  0x7e   :  { %2714 = vmatpush3.bf16.msra.mxu0 %v2713_v10  ;;  %v2765_v10 = vpack.c.bf16 %v309_v2, %v308_v1  ;;  %v370_v1 = vld [vmem:[%s4730_s1 + $0xa20] sm:$0xff]  ;;  %v371_v2 = vld [vmem:[%s4730_s1 + $0xa28] sm:$0xff] }
  0x7f   :  { %2746 = vmatpush3.bf16.msra.mxu1 %v2745_v11  ;;  %2716 = vmatprep.subr.bf16.mxu0 %v2715_v12  ;;  %v2797_v11 = vpack.c.bf16 %v341_v5, %v340_v3  ;;  %v2767_v12 = vpack.c.bf16 %v327_v7, %v326_v6  ;;  %v3036_v3 = vmov 0.0   ;;  %v374_v6 = vld [vmem:[%s4730_s1 + $0xa40] sm:$0xff]  ;;  %v375_v7 = vld [vmem:[%s4730_s1 + $0xa48] sm:$0xff] }
  0x80   :  { %2748 = vmatprep.subr.bf16.mxu1 %v2747_v15  ;;  %v2799_v15 = vpack.c.bf16 %v359_v9, %v358_v8  ;;  %v2828_v8 = vpack.c.bf16 %v375_v7, %v374_v6  ;;  %v376_v9 = vld [vmem:[%s4730_s1 + $0xa50] sm:$0xff]  ;;  %v1212_v7 = vld [vmem:[%s4732_s2 + $0xe0] sm:$0xff] }
  0x82   :  { %2718 = vmatpush3.bf16.msra.mxu0 %v2717_v21  ;;  %v2769_v21 = vpack.c.bf16 %v311_v14, %v310_v13  ;;  %v379_v13 = vld [vmem:[%s4730_s1 + $0xa68] sm:$0xff] }
  0x83   :  { %2750 = vmatpush3.bf16.msra.mxu1 %v2749_v22  ;;  %2752 = vmatprep.subr.bf16.mxu0 %v2751_v23  ;;  %v2801_v22 = vpack.c.bf16 %v343_v16, %v342_v26  ;;  %v2771_v23 = vpack.c.bf16 %v329_v36, %v328_v17  ;;  %v380_v26 = vld [vmem:[%s4730_s1 + $0xa70] sm:$0xff] }
  0x84   :  { %2784 = vmatprep.subr.bf16.mxu1 %v2783_v29  ;;  %v2803_v29 = vpack.c.bf16 %v361_v19, %v360_v18  ;;  %v45_v17 = vld [vmem:[%s4731_s0 + $0x50] sm:$0xf] }
  0x85   :  { %897 = vmatmul.mubr.f32.vlgmr.msra.gmra.mrb[6].mxu0 %v3744_v60  ;;  %v306_v60 = vld [vmem:[%s4730_s1 + $0x820] sm:$0xff] }
  0x86   :  { %2754 = vmatpush3.bf16.msra.mxu0 %v2753_v37  ;;  %967 = vmatmul.mubr.f32.vlgmr.msra.gmra.mrb[6].mxu1 %v3749_v62  ;;  %v339_v62 = vld [vmem:[%s4730_s1 + $0x928] sm:$0xff]  ;;  %v2761_v61 = vpack.c.bf16 %v307_v53, %v306_v60  ;;  %v2773_v37 = vpack.c.bf16 %v313_v27, %v312_v24  ;;  %v348_v53 = vld [vmem:[%s4730_s1 + $0x970] sm:$0xff] }
  0x87   :  { %2786 = vmatpush3.bf16.msra.mxu1 %v2785_v39  ;;  %2756 = vmatprep.subr.bf16.mxu0 %v2755_v40  ;;  %v2793_v63 = vpack.c.bf16 %v339_v62, %v338_v54  ;;  %v2805_v39 = vpack.c.bf16 %v345_v30, %v344_v28  ;;  %v2775_v40 = vpack.c.bf16 %v331_v32, %v330_v31  ;;  %v349_v54 = vld [vmem:[%s4730_s1 + $0x978] sm:$0xff]  ;;  %v1184_v30 = vld [vmem:[%s4732_s2] sm:$0xff] }
  0x88   :  { %2788 = vmatprep.subr.bf16.mxu1 %v2787_v43  ;;  %1036 = vmatprep.mubr.f32.mxu0 %v400_v46  ;;  %v2807_v43 = vpack.c.bf16 %v363_v34, %v362_v33  ;;  %v364_v46 = vld [vmem:[%s4730_s1 + $0x9f0] sm:$0xff]  ;;  %v2813_v62 = vpack.c.bf16 %v349_v54, %v348_v53  ;;  %v1188_v31 = vld [vmem:[%s4732_s2 + $0x20] sm:$0xff]  ;;  %v1203_v53 = vld [vmem:[%s4732_s2 + $0x98] sm:$0xff] }
  0x89   :  { %1106 = vmatprep.mubr.f32.mxu1 %v401_v49  ;;  %v2809_v49 = vpack.c.bf16 %v347_v44, %v346_v20  ;;  %v2811_v60 = vpack.c.bf16 %v365_v47, %v364_v46  ;;  %v2841_v34 = vpack.c.bf16 %v1188_v31, %v1184_v30  ;;  %v1195_v20 = vld [vmem:[%s4732_s2 + $0x58] sm:$0xff]  ;;  %v2843_v44 = vpack.c.bf16 %v1197_v42, %v1193_v41  ;;  %v1196_v46 = vld [vmem:[%s4732_s2 + $0x60] sm:$0xff] }
  0x8a   :  { %2758 = vmatpush3.bf16.msra.mxu0 %v2757_v50  ;;  %v2779_v50 = vpack.c.bf16 %v333_v25, %v332_v45  ;;  %v1199_v45 = vld [vmem:[%s4732_s2 + $0x78] sm:$0xff]  ;;  %v1192_v25 = vld [vmem:[%s4732_s2 + $0x40] sm:$0xff] }
  0x8b   :  { %2790 = vmatpush3.bf16.msra.mxu1 %v2789_v51  ;;  %2760 = vmatprep.subr.bf16.mxu0 %v2759_v52  ;;  %v316_v51 = vld [vmem:[%s4730_s1 + $0x870] sm:$0xff]  ;;  %v317_v52 = vld [vmem:[%s4730_s1 + $0x878] sm:$0xff]  ;;  %v2875_v47 = vpack.c.bf16 %v1199_v45, %v1195_v20  ;;  %v1224_v30 = vld [vmem:[%s4732_s2 + $0x140] sm:$0xff] }
  0x8c   :  { %2792 = vmatprep.subr.bf16.mxu1 %v2791_v55  ;;  %v2781_v55 = vpack.c.bf16 %v317_v52, %v316_v51  ;;  %v1201_v51 = vld [vmem:[%s4732_s2 + $0x88] sm:$0xff]  ;;  %v1207_v54 = vld [vmem:[%s4732_s2 + $0xb8] sm:$0xff]  ;;  %v1228_v31 = vld [vmem:[%s4732_s2 + $0x160] sm:$0xff] }
  0x8d   :  { %v1239_v41 = vld [vmem:[%s4732_s2 + $0x1b8] sm:$0xff]  ;;  %v2861_v42 = vpack.c.bf16 %v1228_v31, %v1224_v30  ;;  %v1232_v45 = vld [vmem:[%s4732_s2 + $0x180] sm:$0xff] }
  0x8e   :  { %2762 = vmatpush3.bf16.msra.mxu0 %v2761_v61  ;;  %v368_v61 = vld [vmem:[%s4730_s1 + $0xa10] sm:$0xff] }
  0x8f   :  { %2794 = vmatpush3.bf16.msra.mxu1 %v2793_v63  ;;  %2764 = vmatprep.subr.bf16.mxu0 %v2763_v0  ;;  %v369_v63 = vld [vmem:[%s4730_s1 + $0xa18] sm:$0xff] }
  0x90   :  { %2796 = vmatprep.subr.bf16.mxu1 %v2795_v4  ;;  %v2819_v0 = vpack.c.bf16 %v369_v63, %v368_v61  ;;  %v373_v4 = vld [vmem:[%s4730_s1 + $0xa38] sm:$0xff]  ;;  %v2849_v61 = vpack.c.bf16 %v1204_v57, %v1200_v56  ;;  %v1206_v63 = vld [vmem:[%s4732_s2 + $0xb0] sm:$0xff]  ;;  %v1244_v56 = vld [vmem:[%s4732_s2 + $0x1e0] sm:$0xff] }
  0x91   :  { %v1242_v57 = vld [vmem:[%s4732_s2 + $0x1d0] sm:$0xff] }
  0x92   :  { %2766 = vmatpush3.bf16.msra.mxu0 %v2765_v10  ;;  %v377_v10 = vld [vmem:[%s4730_s1 + $0xa58] sm:$0xff] }
  0x93   :  { %2798 = vmatpush3.bf16.msra.mxu1 %v2797_v11  ;;  %2768 = vmatprep.subr.bf16.mxu0 %v2767_v12  ;;  %v2831_v11 = vpack.c.bf16 %v377_v10, %v376_v9  ;;  %v378_v12 = vld [vmem:[%s4730_s1 + $0xa60] sm:$0xff]  ;;  %v1214_v9 = vld [vmem:[%s4732_s2 + $0xf0] sm:$0xff]  ;;  %v1217_v10 = vld [vmem:[%s4732_s2 + $0x108] sm:$0xff] }
  0x94   :  { %2800 = vmatprep.subr.bf16.mxu1 %v2799_v15  ;;  %v2834_v14 = vpack.c.bf16 %v379_v13, %v378_v12  ;;  %v381_v15 = vld [vmem:[%s4730_s1 + $0xa78] sm:$0xff] }
  0x95   :  { %v2837_v16 = vpack.c.bf16 %v381_v15, %v380_v26  ;;  %v1219_v12 = vld [vmem:[%s4732_s2 + $0x118] sm:$0xff] }
  0x96   :  { %2770 = vmatpush3.bf16.msra.mxu0 %v2769_v21  ;;  %v1185_v21 = vld [vmem:[%s4732_s2 + $0x8] sm:$0xff] }
  0x97   :  { %2802 = vmatpush3.bf16.msra.mxu1 %v2801_v22  ;;  %2772 = vmatprep.subr.bf16.mxu0 %v2771_v23  ;;  %v1189_v22 = vld [vmem:[%s4732_s2 + $0x28] sm:$0xff]  ;;  %v1187_v23 = vld [vmem:[%s4732_s2 + $0x18] sm:$0xff] }
  0x98   :  { %2804 = vmatprep.subr.bf16.mxu1 %v2803_v29  ;;  %v2839_v28 = vpack.c.bf16 %v1189_v22, %v1185_v21  ;;  %v1191_v29 = vld [vmem:[%s4732_s2 + $0x38] sm:$0xff]  ;;  %v1225_v21 = vld [vmem:[%s4732_s2 + $0x148] sm:$0xff] }
  0x99   :  { %v2871_v33 = vpack.c.bf16 %v1191_v29, %v1187_v23  ;;  %v1229_v22 = vld [vmem:[%s4732_s2 + $0x168] sm:$0xff]  ;;  %v1227_v23 = vld [vmem:[%s4732_s2 + $0x158] sm:$0xff] }
  0x9a   :  { %2774 = vmatpush3.bf16.msra.mxu0 %v2773_v37  ;;  %v1186_v37 = vld [vmem:[%s4732_s2 + $0x10] sm:$0xff]  ;;  %v2859_v29 = vpack.c.bf16 %v1229_v22, %v1225_v21 }
  0x9b   :  { %2806 = vmatpush3.bf16.msra.mxu1 %v2805_v39  ;;  %2776 = vmatprep.subr.bf16.mxu0 %v2775_v40  ;;  %v1190_v39 = vld [vmem:[%s4732_s2 + $0x30] sm:$0xff] }
  0x9c   :  { %2808 = vmatprep.subr.bf16.mxu1 %v2807_v43  ;;  %v2873_v40 = vpack.c.bf16 %v1190_v39, %v1186_v37  ;;  %v1233_v37 = vld [vmem:[%s4732_s2 + $0x188] sm:$0xff] }
  0x9d   :  { %v1237_v39 = vld [vmem:[%s4732_s2 + $0x1a8] sm:$0xff] }
  0x9e   :  { %2778 = vmatpush3.bf16.msra.mxu0 %v2777_v48  ;;  %v2845_v48 = vpack.c.bf16 %v1196_v46, %v1192_v25  ;;  %v1236_v25 = vld [vmem:[%s4732_s2 + $0x1a0] sm:$0xff]  ;;  %v1234_v46 = vld [vmem:[%s4732_s2 + $0x190] sm:$0xff] }
  0x9f   :  { %2810 = vmatpush3.bf16.msra.mxu1 %v2809_v49  ;;  %2780 = vmatprep.subr.bf16.mxu0 %v2779_v50  ;;  %v1194_v49 = vld [vmem:[%s4732_s2 + $0x50] sm:$0xff] }
  0xa0   :  { %2812 = vmatprep.subr.bf16.mxu1 %v2811_v60  ;;  %v1198_v50 = vld [vmem:[%s4732_s2 + $0x70] sm:$0xff]  ;;  %v1205_v60 = vld [vmem:[%s4732_s2 + $0xa8] sm:$0xff] }
  0xa1   :  { %v2877_v52 = vpack.c.bf16 %v1198_v50, %v1194_v49  ;;  %v1241_v49 = vld [vmem:[%s4732_s2 + $0x1c8] sm:$0xff] }
  0xa2   :  { %2782 = vmatpush3.bf16.msra.mxu0 %v2781_v55  ;;  %v2847_v55 = vpack.c.bf16 %v1205_v60, %v1201_v51  ;;  %v1245_v50 = vld [vmem:[%s4732_s2 + $0x1e8] sm:$0xff]  ;;  %v1243_v51 = vld [vmem:[%s4732_s2 + $0x1d8] sm:$0xff]  ;;  %v2865_v60 = vpack.c.bf16 %v1236_v25, %v1232_v45 }
  0xa3   :  { %2814 = vmatpush3.bf16.msra.mxu1 %v2813_v62  ;;  %2815 = vmatprep.subr.bf16.mxu0 %v3034_v59  ;;  %v2879_v62 = vpack.c.bf16 %v1207_v54, %v1203_v53  ;;  %v2867_v54 = vpack.c.bf16 %v1245_v50, %v1241_v49  ;;  %v1423_v45 = vld [vmem:[%s4733_s3 + $0x68] sm:$0xff]  ;;  %v1421_v25 = vld [vmem:[%s4733_s3 + $0x58] sm:$0xff]  ;;  %v1418_v50 = vld [vmem:[%s4733_s3 + $0x40] sm:$0xff] }
  0xa4   :  { %2840 = vmatprep.subr.bf16.mxu1 %v2839_v28 }
  0xa5   :  { %1037 = vmatmul.mubr.f32.vlgmr.msra.gmra.mrb[8].mxu0 %v3952_v35  ;;  %v2822_v35 = vpack.c.bf16 %v371_v2, %v370_v1  ;;  %v1213_v1 = vld [vmem:[%s4732_s2 + $0xe8] sm:$0xff] }
  0xa6   :  { %2817 = vmatpush3.bf16.msra.mxu0 %v2816_v58  ;;  %1107 = vmatmul.mubr.f32.vlgmr.msra.gmra.mrb[8].mxu1 %v3957_v38  ;;  %v372_v38 = vld [vmem:[%s4730_s1 + $0xa30] sm:$0xff] }
  0xa7   :  { %2818 = vmatprep.subr.bf16.mxu0 %v3034_v59  ;;  %2417 = vmatprep.mubr.msk.f32.mxu0 %vm3035_vm0, %v3036_v3  ;;  %v2825_v5 = vpack.c.bf16 %v373_v4, %v372_v38  ;;  %v1202_v58 = vld [vmem:[%s4732_s2 + $0x90] sm:$0xff]  ;;  %v1211_v38 = vld [vmem:[%s4732_s2 + $0xd8] sm:$0xff] }
  0xa8   :  { %1312 = vmatprep.mubr.f32.mxu1 %v3036_v3  ;;  %2842 = vmatpush1.bf16.msra.mxu1 %v2841_v34  ;;  %v2881_v2 = vpack.c.bf16 %v1206_v63, %v1202_v58  ;;  %v1215_v4 = vld [vmem:[%s4732_s2 + $0xf8] sm:$0xff]  ;;  %v1230_v34 = vld [vmem:[%s4732_s2 + $0x170] sm:$0xff] }
  0xa9   :  { %2844 = vmatprep.subr.bf16.mxu1 %v2843_v44  ;;  %v2883_v6 = vpack.c.bf16 %v1215_v4, %v1211_v38  ;;  %v2863_v44 = vpack.c.bf16 %v1237_v39, %v1233_v37 }
  0xaa   :  { %2820 = vmatpush3.bf16.msra.mxu0 %v2819_v0  ;;  %v1209_v0 = vld [vmem:[%s4732_s2 + $0xc8] sm:$0xff] }
  0xab   :  { %2821 = vmatprep.subr.bf16.mxu0 %v3034_v59 }
  0xac   :  { %2846 = vmatpush1.bf16.msra.mxu1 %v2845_v48  ;;  %v1238_v48 = vld [vmem:[%s4732_s2 + $0x1b0] sm:$0xff] }
  0xad   :  { %2848 = vmatprep.subr.bf16.mxu1 %v2847_v55  ;;  %v2897_v53 = vpack.c.bf16 %v1238_v48, %v1234_v46  ;;  %v1425_v46 = vld [vmem:[%s4733_s3 + $0x78] sm:$0xff] }
  0xae   :  { %2823 = vmatpush3.bf16.msra.mxu0 %v2822_v35  ;;  %v2851_v35 = vpack.c.bf16 %v1213_v1, %v1209_v0 }
  0xaf   :  { %2824 = vmatprep.subr.bf16.mxu0 %v3034_v59 }
  0xb0   :  { %2850 = vmatpush1.bf16.msra.mxu1 %v2849_v61  ;;  %v1246_v61 = vld [vmem:[%s4732_s2 + $0x1f0] sm:$0xff] }
  0xb1   :  { %2852 = vmatprep.subr.bf16.mxu1 %v2851_v35  ;;  %v2901_v0 = vpack.c.bf16 %v1246_v61, %v1242_v57  ;;  %v1431_v57 = vld [vmem:[%s4733_s3 + $0xa8] sm:$0xff]  ;;  %v1433_v61 = vld [vmem:[%s4733_s3 + $0xb8] sm:$0xff] }
  0xb2   :  { %2826 = vmatpush3.bf16.msra.mxu0 %v2825_v5  ;;  %v1208_v5 = vld [vmem:[%s4732_s2 + $0xc0] sm:$0xff] }
  0xb3   :  { %2827 = vmatprep.subr.bf16.mxu0 %v3034_v59  ;;  %v2853_v13 = vpack.c.bf16 %v1212_v7, %v1208_v5  ;;  %v1415_v7 = vld [vmem:[%s4733_s3 + $0x28] sm:$0xff] }
  0xb5   :  { %2854 = vmatpush1.bf16.msra.mxu1 %v2853_v13 }
  0xb6   :  { %2829 = vmatpush3.bf16.msra.mxu0 %v2828_v8  ;;  %v1210_v8 = vld [vmem:[%s4732_s2 + $0xd0] sm:$0xff] }
  0xb7   :  { %2830 = vmatprep.subr.bf16.mxu0 %v3034_v59  ;;  %v2885_v26 = vpack.c.bf16 %v1214_v9, %v1210_v8  ;;  %v1413_v8 = vld [vmem:[%s4733_s3 + $0x18] sm:$0xff] }
  0xba   :  { %2832 = vmatpush3.bf16.msra.mxu0 %v2831_v11  ;;  %v1221_v11 = vld [vmem:[%s4732_s2 + $0x128] sm:$0xff] }
  0xbb   :  { %2833 = vmatprep.subr.bf16.mxu0 %v3034_v59  ;;  %v2855_v15 = vpack.c.bf16 %v1221_v11, %v1217_v10  ;;  %v1417_v10 = vld [vmem:[%s4733_s3 + $0x38] sm:$0xff] }
  0xbd   :  { %2856 = vmatprep.subr.bf16.mxu1 %v2855_v15 }
  0xbe   :  { %2835 = vmatpush3.bf16.msra.mxu0 %v2834_v14  ;;  %v1223_v14 = vld [vmem:[%s4732_s2 + $0x138] sm:$0xff] }
  0xbf   :  { %2836 = vmatprep.subr.bf16.mxu0 %v3034_v59 }
  0xc2   :  { %2838 = vmatpush3.bf16.msra.mxu0 %v2837_v16  ;;  %v1216_v16 = vld [vmem:[%s4732_s2 + $0x100] sm:$0xff] }
  0xc3   :  { %2872 = vmatprep.subr.bf16.mxu0 %v2871_v33 }
  0xc5   :  { %2418 = vmatmul.mubr.f32.vlgmr.msra.gmra.mrb[10].mxu0 %v45_v17  ;;  %v1220_v17 = vld [vmem:[%s4732_s2 + $0x120] sm:$0xff] }
  0xc6   :  { %1383 = vmatprep.mubr.f32.mxu0 %v3036_v3  ;;  %2874 = vmatpush1.bf16.msra.mxu0 %v2873_v40  ;;  %v1235_v40 = vld [vmem:[%s4732_s2 + $0x198] sm:$0xff] }
  0xc7   :  { %2876 = vmatprep.subr.bf16.mxu0 %v2875_v47  ;;  %v2895_v47 = vpack.c.bf16 %v1239_v41, %v1235_v40  ;;  %v1410_v40 = vld [vmem:[%s4733_s3] sm:$0xff] }
  0xc8   :  { %v1414_v41 = vld [vmem:[%s4733_s3 + $0x20] sm:$0xff] }
  0xc9   :  { %v2905_v48 = vpack.c.bf16 %v1414_v41, %v1410_v40 }
  0xca   :  { %2878 = vmatpush1.bf16.msra.mxu0 %v2877_v52  ;;  %v1247_v52 = vld [vmem:[%s4732_s2 + $0x1f8] sm:$0xff] }
  0xcb   :  { %2880 = vmatprep.subr.bf16.mxu0 %v2879_v62  ;;  %v2899_v55 = vpack.c.bf16 %v1247_v52, %v1243_v51  ;;  %v1240_v62 = vld [vmem:[%s4732_s2 + $0x1c0] sm:$0xff] }
  0xcc   :  { %v2869_v58 = vpack.c.bf16 %v1244_v56, %v1240_v62  ;;  %v1422_v51 = vld [vmem:[%s4733_s3 + $0x60] sm:$0xff]  ;;  %v1424_v62 = vld [vmem:[%s4733_s3 + $0x70] sm:$0xff]  ;;  %v1427_v56 = vld [vmem:[%s4733_s3 + $0x88] sm:$0xff] }
  0xce   :  { %2882 = vmatpush1.bf16.msra.mxu0 %v2881_v2 }
  0xcf   :  { %2884 = vmatprep.subr.bf16.mxu0 %v2883_v6  ;;  %v1411_v6 = vld [vmem:[%s4733_s3 + $0x8] sm:$0xff] }
  0xd0   :  { %v2903_v9 = vpack.c.bf16 %v1415_v7, %v1411_v6  ;;  %v1435_v6 = vld [vmem:[%s4733_s3 + $0xc8] sm:$0xff] }
  0xd1   :  { %v1439_v7 = vld [vmem:[%s4733_s3 + $0xe8] sm:$0xff] }
  0xd2   :  { %2886 = vmatpush1.bf16.msra.mxu0 %v2885_v26 }
  0xf8   :  { %v2014_v36 = vpop.f32.mrb[0].mxu0 }
  0xf9   :  { %v2049_v18 = vpop.f32.mrb[0].mxu1  ;;  %v2015_v19 = vpop.f32.mrb[1].mxu0 }
  0xfa   :  { %v2016_v24 = vadd.f32 %v2015_v19, %v2014_v36  ;;  %v2050_v27 = vpop.f32.mrb[1].mxu1  ;;  %v1218_v36 = vld [vmem:[%s4732_s2 + $0x110] sm:$0xff] }
  0xfb   :  { %v2051_v32 = vadd.f32 %v2050_v27, %v2049_v18  ;;  %v2887_v18 = vpack.c.bf16 %v1223_v14, %v1219_v12  ;;  %v1222_v19 = vld [vmem:[%s4732_s2 + $0x130] sm:$0xff]  ;;  %v2857_v27 = vpack.c.bf16 %v1220_v17, %v1216_v16  ;;  %v2935_v12 = vpack.c.bf16 %v1417_v10, %v1413_v8  ;;  %v1437_v8 = vld [vmem:[%s4733_s3 + $0xd8] sm:$0xff] }
  0xfc   :  { %v2889_v28 = vpack.c.bf16 %v1222_v19, %v1218_v36 }
  0xfd   :  { %v4219_v43 = vadd.f32 %v2051_v32, %v2016_v24  ;;  %v1231_v24 = vld [vmem:[%s4732_s2 + $0x178] sm:$0xff]  ;;  %v1226_v32 = vld [vmem:[%s4732_s2 + $0x150] sm:$0xff]  ;;  %2888 = vmatprep.subr.bf16.mxu0 %v2887_v18  ;;  %2858 = vmatpush1.bf16.msra.mxu1 %v2857_v27 }
  0xfe   :  { %v2891_v33 = vpack.c.bf16 %v1231_v24, %v1227_v23  ;;  %2890 = vmatpush1.bf16.msra.mxu0 %v2889_v28  ;;  %2860 = vmatprep.subr.bf16.mxu1 %v2859_v29  ;;  %v2893_v20 = vpack.c.bf16 %v1230_v34, %v1226_v32 }
 0x100   :  { %2892 = vmatprep.subr.bf16.mxu0 %v2891_v33 }
 0x101   :  { %2862 = vmatpush1.bf16.msra.mxu1 %v2861_v42  ;;  %v1412_v42 = vld [vmem:[%s4733_s3 + $0x10] sm:$0xff] }
 0x102   :  { %2894 = vmatpush1.bf16.msra.mxu0 %v2893_v20  ;;  %2864 = vmatprep.subr.bf16.mxu1 %v2863_v44  ;;  %v1416_v20 = vld [vmem:[%s4733_s3 + $0x30] sm:$0xff]  ;;  %v1419_v44 = vld [vmem:[%s4733_s3 + $0x48] sm:$0xff] }
 0x103   :  { %2896 = vmatprep.subr.bf16.mxu0 %v2895_v47  ;;  %v2937_v49 = vpack.c.bf16 %v1416_v20, %v1412_v42  ;;  %v1454_v42 = vld [vmem:[%s4733_s3 + $0x160] sm:$0xff]  ;;  %v1452_v20 = vld [vmem:[%s4733_s3 + $0x150] sm:$0xff] }
 0x105   :  { %2866 = vmatpush1.bf16.msra.mxu1 %v2865_v60 }
 0x106   :  { %2898 = vmatpush1.bf16.msra.mxu0 %v2897_v53  ;;  %2868 = vmatprep.subr.bf16.mxu1 %v2867_v54  ;;  %v2907_v53 = vpack.c.bf16 %v1423_v45, %v1419_v44  ;;  %v2939_v54 = vpack.c.bf16 %v1425_v46, %v1421_v25  ;;  %v1456_v44 = vld [vmem:[%s4733_s3 + $0x170] sm:$0xff]  ;;  %v1459_v46 = vld [vmem:[%s4733_s3 + $0x188] sm:$0xff] }
 0x107   :  { %2900 = vmatprep.subr.bf16.mxu0 %v2899_v55  ;;  %v1420_v55 = vld [vmem:[%s4733_s3 + $0x50] sm:$0xff]  ;;  %v2957_v25 = vpack.c.bf16 %v1456_v44, %v1452_v20  ;;  %v1637_v44 = vld [vmem:[%s4734_s4 + $0x60] sm:$0xff] }
 0x109   :  { %2870 = vmatpush1.bf16.msra.mxu1 %v2869_v58  ;;  %v1429_v58 = vld [vmem:[%s4733_s3 + $0x98] sm:$0xff] }
 0x10a   :  { %2902 = vmatpush1.bf16.msra.mxu0 %v2901_v0  ;;  %2904 = vmatprep.subr.bf16.mxu1 %v2903_v9  ;;  %v2941_v0 = vpack.c.bf16 %v1424_v62, %v1420_v55  ;;  %v1441_v9 = vld [vmem:[%s4733_s3 + $0xf8] sm:$0xff] }
 0x10b   :  { %2936 = vmatprep.subr.bf16.mxu0 %v2935_v12  ;;  %v1434_v12 = vld [vmem:[%s4733_s3 + $0xc0] sm:$0xff] }
 0x118   :  { %v2084_v63 = vpop.f32.mrb[2].mxu0 }
 0x119   :  { %v2085_v1 = vpop.f32.mrb[3].mxu0  ;;  %v2119_v2 = vpop.f32.mrb[2].mxu1 }
 0x11a   :  { %v2086_v35 = vadd.f32 %v2085_v1, %v2084_v63  ;;  %v2120_v38 = vpop.f32.mrb[3].mxu1  ;;  %v2909_v63 = vpack.c.bf16 %v1422_v51, %v1418_v50  ;;  %v1426_v1 = vld [vmem:[%s4733_s3 + $0x80] sm:$0xff] }
 0x11b   :  { %v2121_v4 = vadd.f32 %v2120_v38, %v2119_v2  ;;  %v1430_v2 = vld [vmem:[%s4733_s3 + $0xa0] sm:$0xff]  ;;  %v2943_v38 = vpack.c.bf16 %v1433_v61, %v1429_v58  ;;  %v1469_v58 = vld [vmem:[%s4733_s3 + $0x1d8] sm:$0xff] }
 0x11c   :  { %v619_v5 = vadd.f32 %v2086_v35, %v4219_v43  ;;  %v2911_v35 = vpack.c.bf16 %v1431_v57, %v1427_v56  ;;  %v2913_v10 = vpack.c.bf16 %v1430_v2, %v1426_v1  ;;  %v1458_v50 = vld [vmem:[%s4733_s3 + $0x180] sm:$0xff]  ;;  %v1467_v56 = vld [vmem:[%s4733_s3 + $0x1c8] sm:$0xff] }
 0x11d   :  { %v1471_v57 = vld [vmem:[%s4733_s3 + $0x1e8] sm:$0xff]  ;;  %v1470_v1 = vld [vmem:[%s4733_s3 + $0x1e0] sm:$0xff] }
 0x11e   :  { %v689_v11 = vadd.f32 %v2121_v4, %v619_v5  ;;  %v1428_v4 = vld [vmem:[%s4733_s3 + $0x90] sm:$0xff]  ;;  %v2931_v61 = vpack.c.bf16 %v1471_v57, %v1467_v56 }
 0x11f   :  { %v1432_v5 = vld [vmem:[%s4733_s3 + $0xb0] sm:$0xff] }
 0x138   :  { %v2154_v43 = vpop.f32.mrb[4].mxu0 }
 0x139   :  { %v2155_v13 = vpop.f32.mrb[5].mxu0  ;;  %v2189_v14 = vpop.f32.mrb[4].mxu1 }
 0x13a   :  { %v2156_v26 = vadd.f32 %v2155_v13, %v2154_v43  ;;  %v2190_v15 = vpop.f32.mrb[5].mxu1  ;;  %v1438_v43 = vld [vmem:[%s4733_s3 + $0xe0] sm:$0xff]  ;;  %v2915_v13 = vpack.c.bf16 %v1439_v7, %v1435_v6  ;;  %v1182_v6 = vlaneseq }
 0x13b   :  { %v2191_v16 = vadd.f32 %v2190_v15, %v2189_v14  ;;  %v2947_v14 = vpack.c.bf16 %v1441_v9, %v1437_v8  ;;  %v1440_v15 = vld [vmem:[%s4733_s3 + $0xf0] sm:$0xff] }
 0x13c   :  { %v759_v17 = vadd.f32 %v2156_v26, %v689_v11  ;;  %v2945_v11 = vpack.c.bf16 %v1432_v5, %v1428_v4  ;;  %v1436_v26 = vld [vmem:[%s4733_s3 + $0xd0] sm:$0xff]  ;;  %v4577_v7 = vshrl.u32 %v1182_v6, 7  ;;  %v1757_v6 = vld [vmem:[%s4735_s6 + $0x38] sm:$0xff] }
 0x13d   :  { %v1472_v4 = vld [vmem:[%s4733_s3 + $0x1f0] sm:$0xff] }
 0x13e   :  { %v829_v36 = vadd.f32 %v2191_v16, %v759_v17  ;;  %v1443_v16 = vld [vmem:[%s4733_s3 + $0x108] sm:$0xff]  ;;  %vm1390_vm1 = vcmp.eq.s32.totalorder %v4577_v7, 0  ;;  %vm1395_vm2 = vcmp.eq.s32.totalorder %v4577_v7, 1  ;;  %vm1400_vm3 = vcmp.eq.s32.totalorder %v4577_v7, 2 }
 0x13f   :  { %v1447_v17 = vld [vmem:[%s4733_s3 + $0x128] sm:$0xff]  ;;  %v4582_v8 = vsel %vm1390_vm1, 1.0, %v3036_v3  ;;  %v4586_v9 = vsel %vm1395_vm2, 1.0, %v3036_v3  ;;  %vm1405_vm4 = vcmp.eq.s32.totalorder %v4577_v7, 3 }
 0x158   :  { %v2224_v18 = vpop.f32.mrb[6].mxu0 }
 0x159   :  { %v2225_v19 = vpop.f32.mrb[7].mxu0  ;;  %v2259_v21 = vpop.f32.mrb[6].mxu1 }
 0x15a   :  { %v2226_v22 = vadd.f32 %v2225_v19, %v2224_v18  ;;  %v2260_v23 = vpop.f32.mrb[7].mxu1  ;;  %v1449_v18 = vld [vmem:[%s4733_s3 + $0x138] sm:$0xff]  ;;  %v2917_v19 = vpack.c.bf16 %v1438_v43, %v1434_v12  ;;  %v1975_v43 = vsel %vm1400_vm3, 1.0, %v3036_v3 }
 0x15b   :  { %v2261_v24 = vadd.f32 %v2260_v23, %v2259_v21  ;;  %v2949_v21 = vpack.c.bf16 %v1440_v15, %v1436_v26  ;;  %v1446_v23 = vld [vmem:[%s4733_s3 + $0x120] sm:$0xff]  ;;  %v1976_v15 = vsel %vm1405_vm4, 1.0, %v3036_v3 }
 0x15c   :  { %v899_v27 = vadd.f32 %v2226_v22, %v829_v36  ;;  %v1445_v36 = vld [vmem:[%s4733_s3 + $0x118] sm:$0xff]  ;;  %v1442_v22 = vld [vmem:[%s4733_s3 + $0x100] sm:$0xff] }
 0x15e   :  { %v969_v28 = vadd.f32 %v2261_v24, %v899_v27  ;;  %v2919_v24 = vpack.c.bf16 %v1447_v17, %v1443_v16  ;;  %v2951_v27 = vpack.c.bf16 %v1449_v18, %v1445_v36  ;;  %v1625_v36 = vld [vmem:[%s4734_s4] sm:$0xff]  ;;  %v1626_v18 = vld [vmem:[%s4734_s4 + $0x8] sm:$0xff] }
 0x178   :  { %v2294_v29 = vpop.f32.mrb[8].mxu0 }
 0x179   :  { %v2295_v30 = vpop.f32.mrb[9].mxu0  ;;  %v2329_v31 = vpop.f32.mrb[8].mxu1 }
 0x17a   :  { %v2296_v32 = vadd.f32 %v2295_v30, %v2294_v29  ;;  %v2330_v33 = vpop.f32.mrb[9].mxu1  ;;  %v1448_v29 = vld [vmem:[%s4733_s3 + $0x130] sm:$0xff]  ;;  %v1451_v30 = vld [vmem:[%s4733_s3 + $0x148] sm:$0xff] }
 0x17b   :  { %v2331_v34 = vadd.f32 %v2330_v33, %v2329_v31  ;;  %v1455_v31 = vld [vmem:[%s4733_s3 + $0x168] sm:$0xff]  ;;  %v1457_v33 = vld [vmem:[%s4733_s3 + $0x178] sm:$0xff] }
 0x17c   :  { %v1039_v37 = vadd.f32 %v2296_v32, %v969_v28  ;;  %v1444_v28 = vld [vmem:[%s4733_s3 + $0x110] sm:$0xff]  ;;  %v1453_v32 = vld [vmem:[%s4733_s3 + $0x158] sm:$0xff]  ;;  %v2923_v40 = vpack.c.bf16 %v1455_v31, %v1451_v30  ;;  %v1630_v30 = vld [vmem:[%s4734_s4 + $0x28] sm:$0xff] }
 0x17d   :  { %v2955_v41 = vpack.c.bf16 %v1457_v33, %v1453_v32  ;;  %v1631_v32 = vld [vmem:[%s4734_s4 + $0x30] sm:$0xff]  ;;  %v1632_v33 = vld [vmem:[%s4734_s4 + $0x38] sm:$0xff] }
 0x17e   :  { %v1109_v39 = vadd.f32 %v2331_v34, %v1039_v37  ;;  %v2921_v34 = vpack.c.bf16 %v1446_v23, %v1442_v22  ;;  %v2953_v37 = vpack.c.bf16 %v1448_v29, %v1444_v28  ;;  %v2968_v22 = vpack.c.bf16 %v1626_v18, %v1625_v36  ;;  %v1629_v29 = vld [vmem:[%s4734_s4 + $0x20] sm:$0xff] }
 0x17f   :  { %v2974_v31 = vpack.c.bf16 %v1630_v30, %v1629_v29 }
 0x198   :  { %v1178_v47 = vpop.f32.mrb[10].mxu0 }
 0x199   :  { %v1179_v52 = vadd.f32 %v1178_v47, %v1109_v39  ;;  %v2419_v60 = vpop.f32.mrb[11].mxu0  ;;  %v1450_v39 = vld [vmem:[%s4733_s3 + $0x140] sm:$0xff]  ;;  %v1463_v47 = vld [vmem:[%s4733_s3 + $0x1a8] sm:$0xff] }
 0x19a   :  { %v2925_v45 = vpack.c.bf16 %v1454_v42, %v1450_v39  ;;  %v2927_v51 = vpack.c.bf16 %v1463_v47, %v1459_v46  ;;  %v1462_v60 = vld [vmem:[%s4733_s3 + $0x1a0] sm:$0xff]  ;;  %v1634_v39 = vld [vmem:[%s4734_s4 + $0x48] sm:$0xff]  ;;  %v1636_v42 = vld [vmem:[%s4734_s4 + $0x58] sm:$0xff] }
 0x19b   :  { %1313 = vmatmul.mubr.f32.vlgmr.msra.gmra.mrb[10].mxu1 %v1179_v52  ;;  %1384 = vmatmul.mubr.f32.vlgmr.msra.gmra.mrb[12].mxu0 %v1179_v52  ;;  %v2929_v55 = vpack.c.bf16 %v1462_v60, %v1458_v50  ;;  %v1639_v46 = vld [vmem:[%s4734_s4 + $0x70] sm:$0xff]  ;;  %v1640_v47 = vld [vmem:[%s4734_s4 + $0x78] sm:$0xff] }
 0x19c   :  { %2906 = vmatpush1.bf16.msra.mxu1 %v2905_v48  ;;  %2938 = vmatpush1.bf16.msra.mxu0 %v2937_v49  ;;  %v1461_v48 = vld [vmem:[%s4733_s3 + $0x198] sm:$0xff] }
 0x19d   :  { %2908 = vmatprep.subr.bf16.mxu1 %v2907_v53  ;;  %2940 = vmatprep.subr.bf16.mxu0 %v2939_v54  ;;  %v1465_v49 = vld [vmem:[%s4733_s3 + $0x1b8] sm:$0xff]  ;;  %v1460_v53 = vld [vmem:[%s4733_s3 + $0x190] sm:$0xff] }
 0x19e   :  { %1538 = vmatprep.mubr.f32.mxu1 %v3036_v3  ;;  %1609 = vmatprep.mubr.f32.mxu0 %v3036_v3  ;;  %v2959_v52 = vpack.c.bf16 %v1465_v49, %v1461_v48  ;;  %v1464_v54 = vld [vmem:[%s4733_s3 + $0x1b0] sm:$0xff]  ;;  %v2989_v48 = vpack.c.bf16 %v1640_v47, %v1639_v46 }
 0x19f   :  { %v2961_v62 = vpack.c.bf16 %v1464_v54, %v1460_v53 }
 0x1a0   :  { %2910 = vmatpush1.bf16.msra.mxu1 %v2909_v63  ;;  %2942 = vmatpush1.bf16.msra.mxu0 %v2941_v0  ;;  %v1473_v63 = vld [vmem:[%s4733_s3 + $0x1f8] sm:$0xff]  ;;  %v1466_v0 = vld [vmem:[%s4733_s3 + $0x1c0] sm:$0xff] }
 0x1a1   :  { %2912 = vmatprep.subr.bf16.mxu1 %v2911_v35  ;;  %2944 = vmatprep.subr.bf16.mxu0 %v2943_v38  ;;  %v2963_v2 = vpack.c.bf16 %v1473_v63, %v1469_v58  ;;  %v2933_v35 = vpack.c.bf16 %v1470_v1, %v1466_v0  ;;  %v1468_v38 = vld [vmem:[%s4733_s3 + $0x1d0] sm:$0xff]  ;;  %v1750_v58 = vld [vmem:[%s4735_s6] sm:$0xff]  ;;  %v1753_v1 = vld [vmem:[%s4735_s6 + $0x18] sm:$0xff] }
 0x1a2   :  { %v2965_v5 = vpack.c.bf16 %v1472_v4, %v1468_v38  ;;  %v1752_v0 = vld [vmem:[%s4735_s6 + $0x10] sm:$0xff]  ;;  %v1755_v38 = vld [vmem:[%s4735_s6 + $0x28] sm:$0xff] }
 0x1a4   :  { %2914 = vmatpush1.bf16.msra.mxu1 %v2913_v10  ;;  %2946 = vmatpush1.bf16.msra.mxu0 %v2945_v11 }
 0x1a5   :  { %2916 = vmatprep.subr.bf16.mxu1 %v2915_v13  ;;  %2948 = vmatprep.subr.bf16.mxu0 %v2947_v14 }
 0x1a8   :  { %2918 = vmatpush1.bf16.msra.mxu1 %v2917_v19  ;;  %2950 = vmatpush1.bf16.msra.mxu0 %v2949_v21 }
 0x1a9   :  { %2920 = vmatprep.subr.bf16.mxu1 %v2919_v24  ;;  %2952 = vmatprep.subr.bf16.mxu0 %v2951_v27  ;;  %v1627_v24 = vld [vmem:[%s4734_s4 + $0x10] sm:$0xff]  ;;  %v1628_v27 = vld [vmem:[%s4734_s4 + $0x18] sm:$0xff] }
 0x1aa   :  { %v2971_v28 = vpack.c.bf16 %v1628_v27, %v1627_v24 }
 0x1ac   :  { %2922 = vmatpush1.bf16.msra.mxu1 %v2921_v34  ;;  %2954 = vmatpush1.bf16.msra.mxu0 %v2953_v37  ;;  %v2977_v34 = vpack.c.bf16 %v1632_v33, %v1631_v32  ;;  %v1633_v37 = vld [vmem:[%s4734_s4 + $0x40] sm:$0xff] }
 0x1ad   :  { %2924 = vmatprep.subr.bf16.mxu1 %v2923_v40  ;;  %2956 = vmatprep.subr.bf16.mxu0 %v2955_v41  ;;  %v2980_v40 = vpack.c.bf16 %v1634_v39, %v1633_v37  ;;  %v1635_v41 = vld [vmem:[%s4734_s4 + $0x50] sm:$0xff] }
 0x1ae   :  { %v2983_v20 = vpack.c.bf16 %v1636_v42, %v1635_v41 }
 0x1b0   :  { %2926 = vmatpush1.bf16.msra.mxu1 %v2925_v45  ;;  %2958 = vmatpush1.bf16.msra.mxu0 %v2957_v25  ;;  %v1638_v45 = vld [vmem:[%s4734_s4 + $0x68] sm:$0xff] }
 0x1b1   :  { %2928 = vmatprep.subr.bf16.mxu1 %v2927_v51  ;;  %2960 = vmatprep.subr.bf16.mxu0 %v2959_v52  ;;  %v2986_v25 = vpack.c.bf16 %v1638_v45, %v1637_v44  ;;  %v1745_v44 = vsub.s32 2, %v4577_v7 }
 0x1b4   :  { %2930 = vmatpush1.bf16.msra.mxu1 %v2929_v55  ;;  %2962 = vmatpush1.bf16.msra.mxu0 %v2961_v62 }
 0x1b5   :  { %2932 = vmatprep.subr.bf16.mxu1 %v2931_v61  ;;  %2964 = vmatprep.subr.bf16.mxu0 %v2963_v2  ;;  %v1751_v61 = vld [vmem:[%s4735_s6 + $0x8] sm:$0xff]  ;;  %v2995_v2 = vpack.c.bf16 %v1753_v1, %v1752_v0 }
 0x1b6   :  { %v2992_v63 = vpack.c.bf16 %v1751_v61, %v1750_v58 }
 0x1b8   :  { %2934 = vmatpush1.bf16.msra.mxu1 %v2933_v35  ;;  %2966 = vmatpush1.bf16.msra.mxu0 %v2965_v5  ;;  %v1754_v35 = vld [vmem:[%s4735_s6 + $0x20] sm:$0xff]  ;;  %v1756_v5 = vld [vmem:[%s4735_s6 + $0x30] sm:$0xff] }
 0x1b9   :  { %2967 = vmatprep.subr.bf16.mxu1 %v3034_v59  ;;  %2991 = vmatprep.subr.bf16.mxu0 %v3034_v59  ;;  %v2998_v4 = vpack.c.bf16 %v1755_v38, %v1754_v35 }
 0x26e   :  { %v1314_v10 = vpop.f32.mrb[10].mxu1  ;;  %v1385_v11 = vpop.f32.mrb[12].mxu0 }
 0x26f   :  { %v1393_v12 = vmul.f32 %v4582_v8, %v1314_v10  ;;  %v1316_v13 = vpop.f32.mrb[11].mxu1  ;;  %v1387_v14 = vpop.f32.mrb[13].mxu0  ;;  %v1403_v16 = vmul.f32 %v1975_v43, %v1385_v11  ;;  %v1759_v10 = vld [vmem:[%s4735_s6 + $0x48] sm:$0xff] }
 0x270   :  { %v1398_v26 = vmul.f32 %v4586_v9, %v1316_v13  ;;  %v1408_v21 = vmul.f32 %v1976_v15, %v1387_v14  ;;  %v1762_v14 = vld [vmem:[%s4735_s6 + $0x60] sm:$0xf] }
 0x272   :  { %v1399_v17 = vadd.f32 %v1398_v26, %v1393_v12  ;;  %v1760_v12 = vld [vmem:[%s4735_s6 + $0x50] sm:$0xff]  ;;  %v1643_v26 = vsub.s32 0, %v4577_v7 }
 0x274   :  { %v1404_v19 = vadd.f32 %v1403_v16, %v1399_v17 }
 0x276   :  { %v1409_v23 = vadd.f32 %v1408_v21, %v1404_v19 }
 0x278   :  { %1539 = vmatmul.mubr.f32.vlgmr.msra.gmra.mrb[12].mxu1 %v1409_v23  ;;  %1610 = vmatmul.mubr.f32.vlgmr.msra.gmra.mrb[14].mxu0 %v1409_v23 }
 0x279   :  { %2969 = vmatpush3.bf16.msra.mxu1 %v2968_v22  ;;  %2452 = vmatprep.mubr.msk.f32.mxu1 %vm3035_vm0, %v3036_v3 }
 0x27a   :  { %2970 = vmatprep.subr.bf16.mxu1 %v3034_v59  ;;  %2481 = vmatprep.mubr.msk.f32.mxu0 %vm3035_vm0, %v3036_v3 }
 0x27b   :  { %2993 = vmatpush3.bf16.msra.mxu0 %v2992_v63 }
 0x27c   :  { %2994 = vmatprep.subr.bf16.mxu0 %v3034_v59 }
 0x27d   :  { %2972 = vmatpush3.bf16.msra.mxu1 %v2971_v28 }
 0x27e   :  { %2973 = vmatprep.subr.bf16.mxu1 %v3034_v59 }
 0x27f   :  { %2996 = vmatpush3.bf16.msra.mxu0 %v2995_v2 }
 0x280   :  { %2997 = vmatprep.subr.bf16.mxu0 %v3034_v59 }
 0x281   :  { %2975 = vmatpush3.bf16.msra.mxu1 %v2974_v31 }
 0x282   :  { %2976 = vmatprep.subr.bf16.mxu1 %v3034_v59 }
 0x283   :  { %2999 = vmatpush3.bf16.msra.mxu0 %v2998_v4 }
 0x284   :  { %3000 = vmatprep.subr.bf16.mxu0 %v3034_v59 }
 0x285   :  { %2978 = vmatpush3.bf16.msra.mxu1 %v2977_v34 }
 0x286   :  { %2979 = vmatprep.subr.bf16.mxu1 %v3034_v59 }
 0x289   :  { %2981 = vmatpush3.bf16.msra.mxu1 %v2980_v40 }
 0x28a   :  { %2982 = vmatprep.subr.bf16.mxu1 %v3034_v59 }
 0x28d   :  { %2984 = vmatpush3.bf16.msra.mxu1 %v2983_v20  ;;  %v1740_v20 = vsub.s32 1, %v4577_v7  ;;  %v1880_v7 = vld [vmem:[%s4737_s8 + $0x10] sm:$0xff] }
 0x28e   :  { %2985 = vmatprep.subr.bf16.mxu1 %v3034_v59 }
 0x291   :  { %2987 = vmatpush3.bf16.msra.mxu1 %v2986_v25 }
 0x292   :  { %2988 = vmatprep.subr.bf16.mxu1 %v3034_v59 }
 0x295   :  { %2990 = vmatpush3.bf16.msra.mxu1 %v2989_v48 }
 0x296   :  { %3009 = vmatprep.subr.bf16.mxu1 %v3034_v59 }
 0x34b   :  { %v1540_v49 = vpop.f32.mrb[12].mxu1  ;;  %v1611_v50 = vpop.f32.mrb[14].mxu0 }
 0x34c   :  { %v1616_v51 = vmul.f32 %v4582_v8, %v1540_v49  ;;  %v1542_v52 = vpop.f32.mrb[13].mxu1  ;;  %v1613_v60 = vpop.f32.mrb[15].mxu0  ;;  %v1620_v54 = vmul.f32 %v1975_v43, %v1611_v50  ;;  %v3001_v8 = vpack.c.bf16 %v1757_v6, %v1756_v5  ;;  %v1761_v43 = vld [vmem:[%s4735_s6 + $0x58] sm:$0xff] }
 0x34d   :  { %v1618_v53 = vmul.f32 %v4586_v9, %v1542_v52  ;;  %v1622_v56 = vmul.f32 %v1976_v15, %v1613_v60  ;;  %v1758_v9 = vld [vmem:[%s4735_s6 + $0x40] sm:$0xff]  ;;  %v3007_v13 = vpack.c.bf16 %v1761_v43, %v1760_v12  ;;  %v1879_v52 = vld [vmem:[%s4737_s8 + $0x8] sm:$0xff] }
 0x34e   :  { %3002 = vmatpush3.bf16.msra.mxu0 %v3001_v8  ;;  %v3004_v11 = vpack.c.bf16 %v1759_v10, %v1758_v9  ;;  %v1624_v15 = vld [vmem:[%s4736_s5] sm:$0x7] }
 0x34f   :  { %v1619_v55 = vadd.f32 %v1618_v53, %v1616_v51  ;;  %3003 = vmatprep.subr.bf16.mxu0 %v3034_v59  ;;  %v1644_v16 = vrot.slane %v1624_v15, %v1643_v26  ;;  %v1741_v45 = vrot.slane %v1624_v15, %v1740_v20  ;;  %v1746_v47 = vrot.slane %v1624_v15, %v1745_v44  ;;  %v1878_v51 = vld [vmem:[%s4737_s8] sm:$0xff]  ;;  %v1881_v53 = vld [vmem:[%s4737_s8 + $0x18] sm:$0x3f] }
 0x350   :  { %v3010_v60 = vpack.c.bf16 %v1879_v52, %v1878_v51 }
 0x351   :  { %v1621_v62 = vadd.f32 %v1620_v54, %v1619_v55  ;;  %v3013_v54 = vpack.c.bf16 %v1881_v53, %v1880_v7  ;;  %v1749_v55 = vld [vmem:[%s4738_s7] sm:$0x7] }
 0x352   :  { %3005 = vmatpush3.bf16.msra.mxu0 %v3004_v11 }
 0x353   :  { %v1623_v57 = vadd.f32 %v1622_v56, %v1621_v62  ;;  %3006 = vmatprep.subr.bf16.mxu0 %v3034_v59  ;;  %v1766_v62 = vrot.slane %v1749_v55, %v1643_v26  ;;  %v1870_v26 = vrot.slane %v1749_v55, %v1740_v20 }
 0x355   :  { %2453 = vmatmul.mubr.f32.vlgmr.msra.gmra.mrb[14].mxu1 %v1623_v57 }
 0x356   :  { %2492 = vmatprep.mubr.msk.f32.mxu1 %vm3035_vm0, %v3036_v3  ;;  %3008 = vmatpush3.bf16.msra.mxu0 %v3007_v13 }
 0x357   :  { %2479 = vmatprep.subr.mxu0 %v3036_v3  ;;  %3011 = vmatpush3.bf16.msra.mxu1 %v3010_v60 }
 0x358   :  { %3012 = vmatprep.subr.bf16.mxu1 %v3034_v59 }
 0x35a   :  { %2480 = vmatpush3.msk.msra.mxu0 %vm1771_vm5, %v1762_v14 }
 0x35b   :  { %3015 = vmatpush3.bf16.msk.msra.mxu1 %vm3014_vm10, %v3013_v54 }
 0x428   :  { %v1711_v17 = vpop.f32.mrb[14].mxu1 }
 0x429   :  { %v1712_v36 = vadd.f32 %v1711_v17, %v1644_v16  ;;  %v2454_v18 = vpop.f32.mrb[15].mxu1  ;;  %v1875_v17 = vrot.slane %v1749_v55, %v1745_v44 }
 0x42b   :  { %v1716_v19 = vsel %vm1715_vm6, %v1712_v36, 0.0 }
 0x42c   :  { %v1717_v21 = vrot.slane %v1716_v19, 4 }
 0x42e   :  { %v1718_v3 = vadd.f32 %v1717_v21, %v1716_v19  ;;  %v1979_v21 = vld [vmem:[%s4739_s9] ss:$0 sm:$0xff] }
 0x430   :  { %v1719_v22 = vrot.slane %v1718_v3, 2 }
 0x432   :  { %v1720_v23 = vadd.f32 %v1719_v22, %v1718_v3 }
 0x434   :  { %v1721_v24 = vrot.slane %v1720_v23, 1 }
 0x436   :  { %v1722_v27 = vadd.f32 %v1721_v24, %v1720_v23 }
 0x438   :  { %v1724_v28 = vmul.f32 0.25, %v1722_v27 }
 0x43a   :  { %v1725_v29 = vsub.f32 %v1712_v36, %v1724_v28 }
 0x43c   :  { %v1726_v30 = vmul.f32 %v1725_v29, %v1725_v29 }
 0x43e   :  { %v1727_v31 = vsel %vm1715_vm6, %v1726_v30, 0.0 }
 0x43f   :  { %v1728_v32 = vrot.slane %v1727_v31, 4 }
 0x441   :  { %v1729_v33 = vadd.f32 %v1728_v32, %v1727_v31 }
 0x443   :  { %v1730_v34 = vrot.slane %v1729_v33, 2 }
 0x445   :  { %v1731_v37 = vadd.f32 %v1730_v34, %v1729_v33 }
 0x447   :  { %v1732_v39 = vrot.slane %v1731_v37, 1 }
 0x449   :  { %v1733_v40 = vadd.f32 %v1732_v39, %v1731_v37 }
 0x44b   :  { %v1734_v41 = vmul.f32 0.25, %v1733_v40 }
 0x44d   :  { %v1735_v42 = vadd.f32 1e-05, %v1734_v41 }
 0x44f   :  { %3030 = vrsqrt.f32 %v1735_v42 }
 0x459   :  { %v3031_v25 = vpop.eup %3030 }
 0x45a   :  { %v1737_v46 = vmul.f32 %v3031_v25, %v1725_v29 }
 0x45c   :  { %v1742_v48 = vmul.f32 %v1741_v45, %v1737_v46 }
 0x45e   :  { %v1747_v49 = vadd.f32 %v1746_v47, %v1742_v48 }
 0x460   :  { %v1748_v50 = vmax.f32 %v1747_v49, 0.0 }
 0x462   :  { %2482 = vmatmul.mubr.msk.f32.vlgmr.msra.gmra.mrb[16].mxu0 %vm1767_vm7, %v1748_v50 }
 0x535   :  { %v1841_v56 = vpop.f32.mrb[16].mxu0 }
 0x536   :  { %v1842_v59 = vadd.f32 %v1841_v56, %v1766_v62  ;;  %v2483_v57 = vpop.f32.mrb[17].mxu0 }
 0x538   :  { %v1846_v58 = vsel %vm1845_vm11, %v1842_v59, 0.0 }
 0x539   :  { %v1847_v61 = vrot.slane %v1846_v58, 4 }
 0x53b   :  { %v1848_v63 = vadd.f32 %v1847_v61, %v1846_v58 }
 0x53d   :  { %v1849_v0 = vrot.slane %v1848_v63, 2 }
 0x53f   :  { %v1850_v1 = vadd.f32 %v1849_v0, %v1848_v63 }
 0x541   :  { %v1851_v2 = vrot.slane %v1850_v1, 1 }
 0x543   :  { %v1852_v35 = vadd.f32 %v1851_v2, %v1850_v1 }
 0x545   :  { %v1853_v38 = vmul.f32 0.25, %v1852_v35 }
 0x547   :  { %v1854_v4 = vsub.f32 %v1842_v59, %v1853_v38 }
 0x549   :  { %v1855_v5 = vmul.f32 %v1854_v4, %v1854_v4 }
 0x54b   :  { %v1856_v6 = vsel %vm1845_vm11, %v1855_v5, 0.0 }
 0x54c   :  { %v1857_v8 = vrot.slane %v1856_v6, 4 }
 0x54e   :  { %v1858_v9 = vadd.f32 %v1857_v8, %v1856_v6 }
 0x550   :  { %v1859_v10 = vrot.slane %v1858_v9, 2 }
 0x552   :  { %v1860_v11 = vadd.f32 %v1859_v10, %v1858_v9 }
 0x554   :  { %v1861_v12 = vrot.slane %v1860_v11, 1 }
 0x556   :  { %v1862_v43 = vadd.f32 %v1861_v12, %v1860_v11 }
 0x558   :  { %v1863_v13 = vmul.f32 0.25, %v1862_v43 }
 0x55a   :  { %v1864_v14 = vadd.f32 1e-05, %v1863_v13 }
 0x55c   :  { %3032 = vrsqrt.f32 %v1864_v14 }
 0x566   :  { %v3033_v15 = vpop.eup %3032 }
 0x567   :  { %v1866_v16 = vmul.f32 %v3033_v15, %v1854_v4 }
 0x569   :  { %v1871_v36 = vmul.f32 %v1870_v26, %v1866_v16 }
 0x56b   :  { %v1876_v18 = vadd.f32 %v1875_v17, %v1871_v36 }
 0x56d   :  { %v1877_v19 = vmax.f32 %v1876_v18, 0.0 }
 0x56f   :  { %2493 = vmatmul.mubr.msk.f32.vlgmr.msra.gmra.mrb[16].mxu1 %vm1889_vm12, %v1877_v19 }
 0x642   :  { %v1963_v3 = vpop.f32.mrb[16].mxu1 }
 0x643   :  { %v1964_v22 = vadd.f32 %v1979_v21, %v1963_v3  ;;  %v2494_v23 = vpop.f32.mrb[17].mxu1 }
 0x645   :  { %1968 = vst.msk [vmem:[%s4740_s10] sm:$0xf] %vm1967_vm13, %v1964_v22 }

</bundles_post_ra>
